<compile_context>
chip_gen: v7x
topology: tpu7x:2x2x1
jax: 0.10.0
libtpu: 0.0.40
codegen_flags: <defaults>
</compile_context>

<pallas_src>
import jax
import jax.numpy as jnp
from jax import lax
from jax.experimental import pallas as pl
from jax.experimental.pallas import tpu as pltpu


def _round_up(x, m):
    return ((x + m - 1) // m) * m


# ----------------------------------------------------------------------------
# Pallas kernel: fused 3-layer MLP head  (Linear -> ReLU) x 3
# ----------------------------------------------------------------------------
def _mlp_head_kernel(x_ref, w1_ref, b1_ref, w2_ref, b2_ref, w3_ref, b3_ref, o_ref):
    # x / weights: bf16 (MXU native); accumulation f32; biases + output f32.
    x = x_ref[...]                                                       # (BM, F_in_pad)
    h1 = jnp.dot(x, w1_ref[...], preferred_element_type=jnp.float32)    # (BM, 1024)
    h1 = jnp.maximum(h1 + b1_ref[...], 0.0).astype(jnp.bfloat16)
    h2 = jnp.dot(h1, w2_ref[...], preferred_element_type=jnp.float32)   # (BM, 512)
    h2 = jnp.maximum(h2 + b2_ref[...], 0.0).astype(jnp.bfloat16)
    h3 = jnp.dot(h2, w3_ref[...], preferred_element_type=jnp.float32)   # (BM, F_out_pad)
    o_ref[...] = jnp.maximum(h3 + b3_ref[...], 0.0).astype(o_ref.dtype)


def mlp_head_pallas(feats, w1, b1, w2, b2, w3, b3):
    """feats: (B, F_in) float32.  Returns (B, F_out) float32."""
    B, f_in = feats.shape
    h1_dim, h2_dim = w1.shape[1], w2.shape[1]
    f_out = w3.shape[1]

    # ---- alignment: lane-pad K of layer 1 and the output width to 128 ------
    f_in_pad = _round_up(f_in, 128)
    f_out_pad = _round_up(f_out, 128)

    # ---- M tiling: one big block for small B; 128/256-row tiles otherwise --
    if B <= 128:
        block_m = _round_up(B, 8)        # single grid step, no per-step overhead
    elif B >= 512:
        block_m = 256
    else:
        block_m = 128                    # >= 2 parallel steps -> both v7x TCs busy
    B_pad = _round_up(B, block_m)

    # Zero-padding extra K columns / output columns does not change the result.
    feats_p = jnp.pad(feats, ((0, B_pad - B), (0, f_in_pad - f_in)))
    w1_p = jnp.pad(w1, ((0, f_in_pad - f_in), (0, 0)))
    w3_p = jnp.pad(w3, ((0, 0), (0, f_out_pad - f_out)))
    b3_p = jnp.pad(b3, ((0, 0), (0, f_out_pad - f_out)))

    # Cast matmul operands to bf16 once, here in the wrapper.
    feats_p = feats_p.astype(jnp.bfloat16)
    w1_p = w1_p.astype(jnp.bfloat16)
    w2_b = w2.astype(jnp.bfloat16)
    w3_p = w3_p.astype(jnp.bfloat16)
    b1_f = b1.astype(jnp.float32)
    b2_f = b2.astype(jnp.float32)
    b3_p = b3_p.astype(jnp.float32)

    grid = (B_pad // block_m,)

    # ---- explicit VMEM budget (weights + biases double-buffered, acts, tmps)
    weight_bytes = 2 * (f_in_pad * h1_dim + h1_dim * h2_dim + h2_dim * f_out_pad)  # bf16
    bias_bytes = 4 * (h1_dim + h2_dim + f_out_pad)                                 # f32
    act_bytes = 2 * block_m * f_in_pad + 4 * block_m * f_out_pad
    tmp_bytes = 6 * block_m * (h1_dim + h2_dim)                                    # f32 + bf16 temporaries
    needed = 2 * (weight_bytes + bias_bytes + act_bytes) + tmp_bytes
    vmem_limit = int(min(max(2 * needed, 16 << 20), 48 << 20))

    flops = 2 * B_pad * (f_in_pad * h1_dim + h1_dim * h2_dim + h2_dim * f_out_pad)
    bytes_accessed = (weight_bytes + bias_bytes
                      + 2 * B_pad * f_in_pad + 4 * B_pad * f_out_pad)

    out = pl.pallas_call(
        _mlp_head_kernel,
        out_shape=jax.ShapeDtypeStruct((B_pad, f_out_pad), jnp.float32),
        grid_spec=pltpu.PrefetchScalarGridSpec(
            num_scalar_prefetch=0,
            grid=grid,
            in_specs=[
                pl.BlockSpec((block_m, f_in_pad), lambda i: (i, 0)),   # activations
                pl.BlockSpec((f_in_pad, h1_dim), lambda i: (0, 0)),    # W1 (full, resident)
                pl.BlockSpec((1, h1_dim), lambda i: (0, 0)),           # b1
                pl.BlockSpec((h1_dim, h2_dim), lambda i: (0, 0)),      # W2 (full, resident)
                pl.BlockSpec((1, h2_dim), lambda i: (0, 0)),           # b2
                pl.BlockSpec((h2_dim, f_out_pad), lambda i: (0, 0)),   # W3 (full, resident)
                pl.BlockSpec((1, f_out_pad), lambda i: (0, 0)),        # b3
            ],
            out_specs=pl.BlockSpec((block_m, f_out_pad), lambda i: (i, 0)),
        ),
        compiler_params=pltpu.CompilerParams(
            dimension_semantics=("parallel",),
            vmem_limit_bytes=vmem_limit,
        ),
        cost_estimate=pl.CostEstimate(
            flops=flops, transcendentals=0, bytes_accessed=bytes_accessed),
    )(feats_p, w1_p, b1_f, w2_b, b2_f, w3_p, b3_p)

    return out[:B, :f_out]


# ----------------------------------------------------------------------------
# Stand-in "resnet" backbone (the real one is injected externally in PyTorch).
# TODO(synk): the actual resnet backbone is an external dependency of the
#             module; a deterministic conv + global-average-pool stand-in
#             producing (B, num_feat_in, 1, 1) features is used instead.
# ----------------------------------------------------------------------------
def fake_resnet(x_nchw, conv_w):
    y = lax.conv_general_dilated(
        x_nchw, conv_w,
        window_strides=(1, 1), padding="SAME",
        dimension_numbers=("NCHW", "OIHW", "NCHW"),
    )
    y = jnp.maximum(y, 0.0)
    feats = jnp.mean(y, axis=(2, 3), keepdims=True)       # (B, num_feat_in, 1, 1)
    return (feats,)                                        # tuple, like resnet(inputs)[0]


# ----------------------------------------------------------------------------
# Full forward pass of resnetHead
# ----------------------------------------------------------------------------
def resnet_head_forward(x_nchw, params):
    feats = fake_resnet(x_nchw, params["conv_w"])[0]
    feats = jnp.squeeze(feats)                             # (B, num_feat_in)
    if feats.ndim == 1:                                    # squeeze() with B == 1
        feats = feats[None, :]
    return mlp_head_pallas(
        feats,
        params["w1"], params["b1"],
        params["w2"], params["b2"],
        params["w3"], params["b3"],
    )


def reference_forward(x_nchw, params):
    feats = fake_resnet(x_nchw, params["conv_w"])[0]
    feats = jnp.squeeze(feats)
    if feats.ndim == 1:
        feats = feats[None, :]
    h1 = jnp.maximum(feats @ params["w1"] + params["b1"], 0.0)
    h2 = jnp.maximum(h1 @ params["w2"] + params["b2"], 0.0)
    h3 = jnp.maximum(h2 @ params["w3"] + params["b3"], 0.0)
    return h3


# ----------------------------------------------------------------------------
def init_params(key, num_feat_in, num_feat_out, in_channels=3):
    ks = jax.random.split(key, 7)
    f32 = jnp.float32
    return {
        "conv_w": 0.1 * jax.random.normal(ks[0], (num_feat_in, in_channels, 3, 3), f32),
        # Linear weights stored as (in, out) == PyTorch weight.T
        "w1": 0.05 * jax.random.normal(ks[1], (num_feat_in, 1024), f32),
        "b1": 0.01 * jax.random.normal(ks[2], (1, 1024), f32),
        "w2": 0.05 * jax.random.normal(ks[3], (1024, 512), f32),
        "b2": 0.01 * jax.random.normal(ks[4], (1, 512), f32),
        "w3": 0.05 * jax.random.normal(ks[5], (512, num_feat_out), f32),
        "b3": 0.01 * jax.random.normal(ks[6], (1, num_feat_out), f32),
    }


if __name__ == "__main__":
    key = jax.random.PRNGKey(0)
    k_x, k_p = jax.random.split(key)

    B, C, H, W = 8, 3, 16, 16
    num_feat_in, num_feat_out = 32, 16

    x = jax.random.normal(k_x, (B, C, H, W), jnp.float32)   # NCHW, like PyTorch
    params = init_params(k_p, num_feat_in, num_feat_out, in_channels=C)

    fwd = jax.jit(resnet_head_forward)
    out = fwd(x, params)
    out = jax.block_until_ready(out)

    ref = reference_forward(x, params)
    assert out.shape == (B, num_feat_out), out.shape
    # bf16 matmul operands (f32 accumulation) -> compare with a looser tolerance
    assert jnp.allclose(out, ref, atol=2e-2, rtol=2e-2), \
        f"max err {jnp.max(jnp.abs(out - ref))}"

    print("KERNEL_OK")
</pallas_src>

<mosaic_0001>
module attributes {stable_mosaic.version = 11 : i64} {
  func.func @_mlp_head_kernel(%arg0: i32, %arg1: memref<8x128xbf16, #tpu.memory_space<vmem>>, %arg2: memref<128x1024xbf16, #tpu.memory_space<vmem>>, %arg3: memref<1x1024xf32, #tpu.memory_space<vmem>>, %arg4: memref<1024x512xbf16, #tpu.memory_space<vmem>>, %arg5: memref<1x512xf32, #tpu.memory_space<vmem>>, %arg6: memref<512x128xbf16, #tpu.memory_space<vmem>>, %arg7: memref<1x128xf32, #tpu.memory_space<vmem>>, %arg8: memref<8x128xf32, #tpu.memory_space<vmem>>) attributes {dimension_semantics = [#tpu.dimension_semantics<parallel>], iteration_bounds = array<i64: 1>, scalar_prefetch = 0 : i64, scratch_operands = 0 : i64, tpu.core_type = #tpu.core_type<tc>, window_params = [{transform_indices = @transform_0, window_bounds = array<i64: 8, 128>}, {pipeline_mode = #tpu.pipeline_mode<synchronous>, transform_indices = @transform_1, window_bounds = array<i64: 128, 1024>}, {pipeline_mode = #tpu.pipeline_mode<synchronous>, transform_indices = @transform_2, window_bounds = array<i64: 1, 1024>}, {pipeline_mode = #tpu.pipeline_mode<synchronous>, transform_indices = @transform_3, window_bounds = array<i64: 1024, 512>}, {pipeline_mode = #tpu.pipeline_mode<synchronous>, transform_indices = @transform_4, window_bounds = array<i64: 1, 512>}, {pipeline_mode = #tpu.pipeline_mode<synchronous>, transform_indices = @transform_5, window_bounds = array<i64: 512, 128>}, {pipeline_mode = #tpu.pipeline_mode<synchronous>, transform_indices = @transform_6, window_bounds = array<i64: 1, 128>}, {transform_indices = @transform_7, window_bounds = array<i64: 8, 128>}]} {
    %c0 = arith.constant 0 : index
    %c0_0 = arith.constant 0 : index
    %0 = vector.load %arg1[%c0, %c0_0] : memref<8x128xbf16, #tpu.memory_space<vmem>>, vector<8x128xbf16>
    %c0_1 = arith.constant 0 : index
    %c0_2 = arith.constant 0 : index
    %1 = vector.load %arg2[%c0_1, %c0_2] : memref<128x1024xbf16, #tpu.memory_space<vmem>>, vector<128x1024xbf16>
    %cst = arith.constant dense<0.000000e+00> : vector<8x1024xf32>
    %2 = tpu.matmul %0, %1, %cst {dimension_numbers = #tpu.dot_dimension_numbers<[1], [0], [0], [1], [0, 0, 1, 1], [], []>} : vector<8x128xbf16>, vector<128x1024xbf16>, vector<8x1024xf32> -> vector<8x1024xf32>
    %c0_3 = arith.constant 0 : index
    %c0_4 = arith.constant 0 : index
    %3 = vector.load %arg3[%c0_3, %c0_4] : memref<1x1024xf32, #tpu.memory_space<vmem>>, vector<1x1024xf32>
    %4 = vector.broadcast %3 : vector<1x1024xf32> to vector<8x1024xf32>
    %5 = arith.addf %2, %4 : vector<8x1024xf32>
    %cst_5 = arith.constant 0.000000e+00 : f32
    %6 = vector.broadcast %cst_5 : f32 to vector<8x1024xf32>
    %7 = arith.maximumf %5, %6 : vector<8x1024xf32>
    %8 = arith.truncf %7 : vector<8x1024xf32> to vector<8x1024xbf16>
    %c0_6 = arith.constant 0 : index
    %c0_7 = arith.constant 0 : index
    %9 = vector.load %arg4[%c0_6, %c0_7] : memref<1024x512xbf16, #tpu.memory_space<vmem>>, vector<1024x512xbf16>
    %cst_8 = arith.constant dense<0.000000e+00> : vector<8x512xf32>
    %10 = tpu.matmul %8, %9, %cst_8 {dimension_numbers = #tpu.dot_dimension_numbers<[1], [0], [0], [1], [0, 0, 1, 1], [], []>} : vector<8x1024xbf16>, vector<1024x512xbf16>, vector<8x512xf32> -> vector<8x512xf32>
    %c0_9 = arith.constant 0 : index
    %c0_10 = arith.constant 0 : index
    %11 = vector.load %arg5[%c0_9, %c0_10] : memref<1x512xf32, #tpu.memory_space<vmem>>, vector<1x512xf32>
    %12 = vector.broadcast %11 : vector<1x512xf32> to vector<8x512xf32>
    %13 = arith.addf %10, %12 : vector<8x512xf32>
    %cst_11 = arith.constant 0.000000e+00 : f32
    %14 = vector.broadcast %cst_11 : f32 to vector<8x512xf32>
    %15 = arith.maximumf %13, %14 : vector<8x512xf32>
    %16 = arith.truncf %15 : vector<8x512xf32> to vector<8x512xbf16>
    %c0_12 = arith.constant 0 : index
    %c0_13 = arith.constant 0 : index
    %17 = vector.load %arg6[%c0_12, %c0_13] : memref<512x128xbf16, #tpu.memory_space<vmem>>, vector<512x128xbf16>
    %cst_14 = arith.constant dense<0.000000e+00> : vector<8x128xf32>
    %18 = tpu.matmul %16, %17, %cst_14 {dimension_numbers = #tpu.dot_dimension_numbers<[1], [0], [0], [1], [0, 0, 1, 1], [], []>} : vector<8x512xbf16>, vector<512x128xbf16>, vector<8x128xf32> -> vector<8x128xf32>
    %c0_15 = arith.constant 0 : index
    %c0_16 = arith.constant 0 : index
    %19 = vector.load %arg7[%c0_15, %c0_16] : memref<1x128xf32, #tpu.memory_space<vmem>>, vector<1x128xf32>
    %20 = vector.broadcast %19 : vector<1x128xf32> to vector<8x128xf32>
    %21 = arith.addf %18, %20 : vector<8x128xf32>
    %cst_17 = arith.constant 0.000000e+00 : f32
    %22 = vector.broadcast %cst_17 : f32 to vector<8x128xf32>
    %23 = arith.maximumf %21, %22 : vector<8x128xf32>
    %c0_18 = arith.constant 0 : index
    %c0_19 = arith.constant 0 : index
    %24 = vector.load %arg8[%c0_18, %c0_19] : memref<8x128xf32, #tpu.memory_space<vmem>>, vector<8x128xf32>
    tpu.vector_store %arg8[%c0_18, %c0_19], %23 {strides = array<i32>} : memref<8x128xf32, #tpu.memory_space<vmem>>, vector<8x128xf32>,
    return
  }
  func.func @transform_0(%arg0: i32) -> (i32, i32) {
    %c0_i32 = arith.constant 0 : i32
    %c0_i32_0 = arith.constant 0 : i32
    return %arg0, %c0_i32 : i32, i32
  }
  func.func @transform_1(%arg0: i32) -> (i32, i32) {
    %c0_i32 = arith.constant 0 : i32
    %c0_i32_0 = arith.constant 0 : i32
    %c0_i32_1 = arith.constant 0 : i32
    return %c0_i32, %c0_i32_0 : i32, i32
  }
  func.func @transform_2(%arg0: i32) -> (i32, i32) {
    %c0_i32 = arith.constant 0 : i32
    %c0_i32_0 = arith.constant 0 : i32
    %c0_i32_1 = arith.constant 0 : i32
    return %c0_i32, %c0_i32_0 : i32, i32
  }
  func.func @transform_3(%arg0: i32) -> (i32, i32) {
    %c0_i32 = arith.constant 0 : i32
    %c0_i32_0 = arith.constant 0 : i32
    %c0_i32_1 = arith.constant 0 : i32
    return %c0_i32, %c0_i32_0 : i32, i32
  }
  func.func @transform_4(%arg0: i32) -> (i32, i32) {
    %c0_i32 = arith.constant 0 : i32
    %c0_i32_0 = arith.constant 0 : i32
    %c0_i32_1 = arith.constant 0 : i32
    return %c0_i32, %c0_i32_0 : i32, i32
  }
  func.func @transform_5(%arg0: i32) -> (i32, i32) {
    %c0_i32 = arith.constant 0 : i32
    %c0_i32_0 = arith.constant 0 : i32
    %c0_i32_1 = arith.constant 0 : i32
    return %c0_i32, %c0_i32_0 : i32, i32
  }
  func.func @transform_6(%arg0: i32) -> (i32, i32) {
    %c0_i32 = arith.constant 0 : i32
    %c0_i32_0 = arith.constant 0 : i32
    %c0_i32_1 = arith.constant 0 : i32
    return %c0_i32, %c0_i32_0 : i32, i32
  }
  func.func @transform_7(%arg0: i32) -> (i32, i32) {
    %c0_i32 = arith.constant 0 : i32
    %c0_i32_0 = arith.constant 0 : i32
    return %arg0, %c0_i32 : i32, i32
  }
}

</mosaic_0001>

<bundles_post_ra>
// kernel: resnet_head_forward.1
= control target key start
LH: loop header
LB: loop body
LE: loop exit
PB: predicated region body
PF: predicated region fallthrough
CT: control target
= control target key end

     0   :  { %v3755_v6 = vmov 0   ;;  %s4938_s0 = inlined_call_operand.vmem [shape: bf16[8,128], index: 0, kind: input, shape index: {}]   ;;  %s4939_s1 = inlined_call_operand.vmem [shape: bf16[128,1024], index: 1, kind: input, shape index: {}]   ;;  %s4940_s2 = inlined_call_operand.vmem [shape: f32[1,1024], index: 2, kind: input, shape index: {}]   ;;  %s4941_s3 = inlined_call_operand.vmem [shape: bf16[1024,512], index: 3, kind: input, shape index: {}]   ;;  %s4942_s4 = inlined_call_operand.vmem [shape: f32[1,512], index: 4, kind: input, shape index: {}]   ;;  %s4943_s5 = inlined_call_operand.vmem [shape: bf16[512,128], index: 5, kind: input, shape index: {}]   ;;  %s4944_s6 = inlined_call_operand.vmem [shape: f32[1,128], index: 6, kind: input, shape index: {}]   ;;  %s4945_s7 = inlined_call_operand.hbm [shape: f32[8,128], index: 7, kind: output, shape index: {}]  }
   0x1   :  { %v29_v0 = vld [vmem:[%s4939_s1] sm:$0xff]  ;;  %487 = vmatprep.mubr.bf16.mxu0 %v3755_v6  ;;  %528 = vmatprep.mubr.bf16.mxu1 %v3755_v6  ;;  %v30_v14 = vld [vmem:[%s4939_s1 + $0x8] sm:$0xff]  ;;  %v31_v58 = vld [vmem:[%s4939_s1 + $0x10] sm:$0xff] }
   0x2   :  { %v33_v1 = vld [vmem:[%s4939_s1 + $0x20] sm:$0xff]  ;;  %v34_v15 = vld [vmem:[%s4939_s1 + $0x28] sm:$0xff]  ;;  %v35_v59 = vld [vmem:[%s4939_s1 + $0x30] sm:$0xff] }
   0x3   :  { %v37_v2 = vld [vmem:[%s4939_s1 + $0x40] sm:$0xff]  ;;  %v2889_v3 = vcombine.high %v29_v0, %v33_v1  ;;  %v2888_v4 = vcombine.low %v29_v0, %v33_v1  ;;  %v38_v16 = vld [vmem:[%s4939_s1 + $0x48] sm:$0xff]  ;;  %v2891_v18 = vcombine.high %v30_v14, %v34_v15  ;;  %v2890_v19 = vcombine.low %v30_v14, %v34_v15  ;;  %v40_v15 = vld [vmem:[%s4939_s1 + $0x58] sm:$0xff] }
   0x4   :  { %v41_v5 = vld [vmem:[%s4939_s1 + $0x60] sm:$0xff]  ;;  %v42_v17 = vld [vmem:[%s4939_s1 + $0x68] sm:$0xff]  ;;  %v2893_v0 = vcombine.high %v31_v58, %v35_v59 }
   0x5   :  { %v2897_v7 = vcombine.high %v37_v2, %v41_v5  ;;  %v45_v8 = vld [vmem:[%s4939_s1 + $0x80] sm:$0xff]  ;;  %455 = vmatprep.subr.bf16.mxu0 %v2889_v3  ;;  %v2896_v10 = vcombine.low %v37_v2, %v41_v5  ;;  %v2899_v20 = vcombine.high %v38_v16, %v42_v17  ;;  %v46_v22 = vld [vmem:[%s4939_s1 + $0x88] sm:$0xff]  ;;  %496 = vmatprep.subr.bf16.mxu1 %v2891_v18  ;;  %v39_v3 = vld [vmem:[%s4939_s1 + $0x50] sm:$0xff] }
   0x6   :  { %v49_v9 = vld [vmem:[%s4939_s1 + $0xa0] sm:$0xff]  ;;  %456 = vmatpush1.bf16.msra.mxu0 %v2888_v4  ;;  %v50_v23 = vld [vmem:[%s4939_s1 + $0xa8] sm:$0xff]  ;;  %497 = vmatpush1.bf16.msra.mxu1 %v2890_v19  ;;  %v2898_v27 = vcombine.low %v38_v16, %v42_v17  ;;  %v43_v4 = vld [vmem:[%s4939_s1 + $0x70] sm:$0xff] }
   0x7   :  { %457 = vmatprep.subr.bf16.mxu0 %v2897_v7  ;;  %v2905_v11 = vcombine.high %v45_v8, %v49_v9  ;;  %v53_v12 = vld [vmem:[%s4939_s1 + $0xc0] sm:$0xff]  ;;  %v2904_v21 = vcombine.low %v45_v8, %v49_v9  ;;  %498 = vmatprep.subr.bf16.mxu1 %v2899_v20  ;;  %v2907_v28 = vcombine.high %v46_v22, %v50_v23  ;;  %v54_v30 = vld [vmem:[%s4939_s1 + $0xc8] sm:$0xff]  ;;  %v32_v7 = vld [vmem:[%s4939_s1 + $0x18] sm:$0xff] }
   0x8   :  { %v57_v13 = vld [vmem:[%s4939_s1 + $0xe0] sm:$0xff]  ;;  %v58_v31 = vld [vmem:[%s4939_s1 + $0xe8] sm:$0xff]  ;;  %v2906_v35 = vcombine.low %v46_v22, %v50_v23  ;;  %v2892_v8 = vcombine.low %v31_v58, %v35_v59  ;;  %v36_v9 = vld [vmem:[%s4939_s1 + $0x38] sm:$0xff]  ;;  %v2900_v16 = vcombine.low %v39_v3, %v43_v4 }
   0x9   :  { %v2913_v24 = vcombine.high %v53_v12, %v57_v13  ;;  %v61_v25 = vld [vmem:[%s4939_s1 + $0x100] sm:$0xff]  ;;  %v2912_v29 = vcombine.low %v53_v12, %v57_v13  ;;  %v2915_v36 = vcombine.high %v54_v30, %v58_v31  ;;  %v62_v38 = vld [vmem:[%s4939_s1 + $0x108] sm:$0xff]  ;;  %v2914_v43 = vcombine.low %v54_v30, %v58_v31  ;;  %v47_v12 = vld [vmem:[%s4939_s1 + $0x90] sm:$0xff] }
   0xa   :  { %458 = vmatpush1.bf16.msra.mxu0 %v2896_v10  ;;  %v65_v26 = vld [vmem:[%s4939_s1 + $0x120] sm:$0xff]  ;;  %499 = vmatpush1.bf16.msra.mxu1 %v2898_v27  ;;  %v66_v39 = vld [vmem:[%s4939_s1 + $0x128] sm:$0xff]  ;;  %v2901_v10 = vcombine.high %v39_v3, %v43_v4  ;;  %v51_v13 = vld [vmem:[%s4939_s1 + $0xb0] sm:$0xff]  ;;  %v2895_v14 = vcombine.high %v32_v7, %v36_v9 }
   0xb   :  { %459 = vmatprep.subr.bf16.mxu0 %v2905_v11  ;;  %v2921_v32 = vcombine.high %v61_v25, %v65_v26  ;;  %v69_v33 = vld [vmem:[%s4939_s1 + $0x140] sm:$0xff]  ;;  %500 = vmatprep.subr.bf16.mxu1 %v2907_v28  ;;  %v2920_v37 = vcombine.low %v61_v25, %v65_v26  ;;  %v2923_v44 = vcombine.high %v62_v38, %v66_v39  ;;  %v70_v46 = vld [vmem:[%s4939_s1 + $0x148] sm:$0xff]  ;;  %v44_v17 = vld [vmem:[%s4939_s1 + $0x78] sm:$0xff] }
   0xc   :  { %v73_v34 = vld [vmem:[%s4939_s1 + $0x160] sm:$0xff]  ;;  %v74_v47 = vld [vmem:[%s4939_s1 + $0x168] sm:$0xff]  ;;  %v2922_v51 = vcombine.low %v62_v38, %v66_v39  ;;  %v2909_v18 = vcombine.high %v47_v12, %v51_v13  ;;  %v55_v19 = vld [vmem:[%s4939_s1 + $0xd0] sm:$0xff]  ;;  %v2903_v22 = vcombine.high %v40_v15, %v44_v17 }
   0xd   :  { %v2929_v40 = vcombine.high %v69_v33, %v73_v34  ;;  %v77_v41 = vld [vmem:[%s4939_s1 + $0x180] sm:$0xff]  ;;  %v2928_v45 = vcombine.low %v69_v33, %v73_v34  ;;  %v2931_v52 = vcombine.high %v70_v46, %v74_v47  ;;  %v78_v53 = vld [vmem:[%s4939_s1 + $0x188] sm:$0xff]  ;;  %v2930_v57 = vcombine.low %v70_v46, %v74_v47  ;;  %v59_v20 = vld [vmem:[%s4939_s1 + $0xf0] sm:$0xff] }
   0xe   :  { %460 = vmatpush1.bf16.msra.mxu0 %v2904_v21  ;;  %v81_v42 = vld [vmem:[%s4939_s1 + $0x1a0] sm:$0xff]  ;;  %501 = vmatpush1.bf16.msra.mxu1 %v2906_v35  ;;  %v82_v55 = vld [vmem:[%s4939_s1 + $0x1a8] sm:$0xff]  ;;  %v2894_v21 = vcombine.low %v32_v7, %v36_v9  ;;  %v48_v23 = vld [vmem:[%s4939_s1 + $0x98] sm:$0xff]  ;;  %v2917_v26 = vcombine.high %v55_v19, %v59_v20 }
   0xf   :  { %461 = vmatprep.subr.bf16.mxu0 %v2913_v24  ;;  %502 = vmatprep.subr.bf16.mxu1 %v2915_v36  ;;  %v2937_v48 = vcombine.high %v77_v41, %v81_v42  ;;  %v85_v49 = vld [vmem:[%s4939_s1 + $0x1c0] sm:$0xff]  ;;  %v2936_v54 = vcombine.low %v77_v41, %v81_v42  ;;  %v2939_v60 = vcombine.high %v78_v53, %v82_v55  ;;  %v86_v61 = vld [vmem:[%s4939_s1 + $0x1c8] sm:$0xff]  ;;  %v52_v25 = vld [vmem:[%s4939_s1 + $0xb8] sm:$0xff] }
  0x10   :  { %v89_v50 = vld [vmem:[%s4939_s1 + $0x1e0] sm:$0xff]  ;;  %v90_v63 = vld [vmem:[%s4939_s1 + $0x1e8] sm:$0xff]  ;;  %v2938_v2 = vcombine.low %v78_v53, %v82_v55  ;;  %v2908_v24 = vcombine.low %v47_v12, %v51_v13  ;;  %v63_v27 = vld [vmem:[%s4939_s1 + $0x110] sm:$0xff]  ;;  %v2911_v30 = vcombine.high %v48_v23, %v52_v25  ;;  %v2910_v36 = vcombine.low %v48_v23, %v52_v25 }
  0x11   :  { %v2945_v56 = vcombine.high %v85_v49, %v89_v50  ;;  %v2944_v62 = vcombine.low %v85_v49, %v89_v50  ;;  %v3904_v1 = vld [vmem:[%s4938_s0] sm:$0xf]  ;;  %v2947_v5 = vcombine.high %v86_v61, %v90_v63  ;;  %v2946_v11 = vcombine.low %v86_v61, %v90_v63  ;;  %v67_v28 = vld [vmem:[%s4939_s1 + $0x130] sm:$0xff]  ;;  %v56_v31 = vld [vmem:[%s4939_s1 + $0xd8] sm:$0xff] }
  0x12   :  { %462 = vmatpush1.bf16.msra.mxu0 %v2912_v29  ;;  %503 = vmatpush1.bf16.msra.mxu1 %v2914_v43  ;;  %v2902_v29 = vcombine.low %v40_v15, %v44_v17  ;;  %v60_v33 = vld [vmem:[%s4939_s1 + $0xf8] sm:$0xff]  ;;  %v2925_v34 = vcombine.high %v63_v27, %v67_v28  ;;  %v71_v35 = vld [vmem:[%s4939_s1 + $0x150] sm:$0xff]  ;;  %v2924_v39 = vcombine.low %v63_v27, %v67_v28 }
  0x13   :  { %463 = vmatprep.subr.bf16.mxu0 %v2921_v32  ;;  %504 = vmatprep.subr.bf16.mxu1 %v2923_v44  ;;  %v2916_v32 = vcombine.low %v55_v19, %v59_v20  ;;  %v64_v38 = vld [vmem:[%s4939_s1 + $0x118] sm:$0xff]  ;;  %v79_v42 = vld [vmem:[%s4939_s1 + $0x190] sm:$0xff]  ;;  %v2918_v44 = vcombine.low %v56_v31, %v60_v33 }
  0x14   :  { %v83_v43 = vld [vmem:[%s4939_s1 + $0x1b0] sm:$0xff]  ;;  %v72_v46 = vld [vmem:[%s4939_s1 + $0x158] sm:$0xff] }
  0x15   :  { %v2941_v49 = vcombine.high %v79_v42, %v83_v43  ;;  %v87_v50 = vld [vmem:[%s4939_s1 + $0x1d0] sm:$0xff]  ;;  %v2940_v55 = vcombine.low %v79_v42, %v83_v43  ;;  %v88_v59 = vld [vmem:[%s4939_s1 + $0x1d8] sm:$0xff] }
  0x16   :  { %464 = vmatpush1.bf16.msra.mxu0 %v2920_v37  ;;  %505 = vmatpush1.bf16.msra.mxu1 %v2922_v51  ;;  %v2919_v37 = vcombine.high %v56_v31, %v60_v33  ;;  %v91_v51 = vld [vmem:[%s4939_s1 + $0x1f0] sm:$0xff]  ;;  %v3332_v15 = vld [vmem:[%s4941_s3 + $0x4c] ss:$16 sps:$4 sm:$0xff]   ;;  %v3342_v25 = vld [vmem:[%s4941_s3 + $0x88] ss:$16 sps:$4 sm:$0xff]  }
  0x17   :  { %465 = vmatprep.subr.bf16.mxu0 %v2929_v40  ;;  %506 = vmatprep.subr.bf16.mxu1 %v2931_v52  ;;  %v68_v40 = vld [vmem:[%s4939_s1 + $0x138] sm:$0xff]  ;;  %v2948_v63 = vcombine.low %v87_v50, %v91_v51  ;;  %v3323_v4 = vld [vmem:[%s4941_s3 + $0x24] ss:$16 sps:$4 sm:$0xff]   ;;  %v3327_v12 = vld [vmem:[%s4941_s3 + $0x40] ss:$16 sps:$4 sm:$0xff]  }
  0x18   :  { %v2926_v52 = vcombine.low %v64_v38, %v68_v40  ;;  %v3329_v9 = vld [vmem:[%s4941_s3 + $0x44] ss:$16 sps:$4 sm:$0xff]   ;;  %v3339_v19 = vld [vmem:[%s4941_s3 + $0x80] ss:$16 sps:$4 sm:$0xff]   ;;  %v3354_v33 = vld [vmem:[%s4941_s3 + $0xc8] ss:$16 sps:$4 sm:$0xff]  }
  0x19   :  { %v3335_v13 = vld [vmem:[%s4941_s3 + $0x64] ss:$16 sps:$4 sm:$0xff]   ;;  %v3345_v23 = vld [vmem:[%s4941_s3 + $0xa0] ss:$16 sps:$4 sm:$0xff]  }
  0x1a   :  { %466 = vmatpush1.bf16.msra.mxu0 %v2928_v45  ;;  %507 = vmatpush1.bf16.msra.mxu1 %v2930_v57  ;;  %v2927_v45 = vcombine.high %v64_v38, %v68_v40  ;;  %v2949_v57 = vcombine.high %v87_v50, %v91_v51  ;;  %v3341_v17 = vld [vmem:[%s4941_s3 + $0x84] ss:$16 sps:$4 sm:$0xff]   ;;  %v3351_v27 = vld [vmem:[%s4941_s3 + $0xc0] ss:$16 sps:$4 sm:$0xff]   ;;  %v3366_v40 = vld [vmem:[%s4941_s3 + $0x108] ss:$16 sps:$4 sm:$0xff]  }
  0x1b   :  { %467 = vmatprep.subr.bf16.mxu0 %v2937_v48  ;;  %508 = vmatprep.subr.bf16.mxu1 %v2939_v60  ;;  %v76_v48 = vld [vmem:[%s4939_s1 + $0x178] sm:$0xff]  ;;  %v3347_v20 = vld [vmem:[%s4941_s3 + $0xa4] ss:$16 sps:$4 sm:$0xff]   ;;  %v3357_v31 = vld [vmem:[%s4941_s3 + $0xe0] ss:$16 sps:$4 sm:$0xff]  }
  0x1c   :  { %v2935_v53 = vcombine.high %v72_v46, %v76_v48  ;;  %v2934_v58 = vcombine.low %v72_v46, %v76_v48  ;;  %v92_v60 = vld [vmem:[%s4939_s1 + $0x1f8] sm:$0xff]  ;;  %v3359_v28 = vld [vmem:[%s4941_s3 + $0xe4] ss:$16 sps:$4 sm:$0xff]   ;;  %v3369_v38 = vld [vmem:[%s4941_s3 + $0x120] ss:$16 sps:$4 sm:$0xff]  }
  0x1d   :  { %v2951_v3 = vcombine.high %v88_v59, %v92_v60  ;;  %v2950_v7 = vcombine.low %v88_v59, %v92_v60  ;;  %v3375_v42 = vld [vmem:[%s4941_s3 + $0x140] ss:$16 sps:$4 sm:$0xff]   ;;  %v3383_v43 = vld [vmem:[%s4941_s3 + $0x164] ss:$16 sps:$4 sm:$0xff]   ;;  %v3378_v48 = vld [vmem:[%s4941_s3 + $0x148] ss:$16 sps:$4 sm:$0xff]  }
  0x1e   :  { %468 = vmatpush1.bf16.msra.mxu0 %v2936_v54  ;;  %509 = vmatpush1.bf16.msra.mxu1 %v2938_v2  ;;  %v80_v54 = vld [vmem:[%s4939_s1 + $0x198] sm:$0xff]  ;;  %v3315_v2 = vld [vmem:[%s4941_s3] ss:$16 sps:$4 sm:$0xff]   ;;  %v3395_v51 = vld [vmem:[%s4941_s3 + $0x1a4] ss:$16 sps:$4 sm:$0xff]  }
  0x1f   :  { %469 = vmatprep.subr.bf16.mxu0 %v2945_v56  ;;  %510 = vmatprep.subr.bf16.mxu1 %v2947_v5  ;;  %v84_v56 = vld [vmem:[%s4939_s1 + $0x1b8] sm:$0xff]  ;;  %v3381_v46 = vld [vmem:[%s4941_s3 + $0x160] ss:$16 sps:$4 sm:$0xff]  }
  0x20   :  { %v2943_v61 = vcombine.high %v80_v54, %v84_v56  ;;  %v3320_v5 = vld [vmem:[%s4941_s3 + $0xc] ss:$16 sps:$4 sm:$0xff]   ;;  %v3387_v50 = vld [vmem:[%s4941_s3 + $0x180] ss:$16 sps:$4 sm:$0xff]  }
  0x21   :  { %v3399_v59 = vld [vmem:[%s4941_s3 + $0x1c0] ss:$16 sps:$4 sm:$0xff]   ;;  %v3404_v60 = vld [vmem:[%s4941_s3 + $0x1cc] ss:$16 sps:$4 sm:$0xff]  }
  0x22   :  { %470 = vmatpush1.bf16.msra.mxu0 %v2944_v62  ;;  %511 = vmatpush1.bf16.msra.mxu1 %v2946_v11  ;;  %v3317_v62 = vld [vmem:[%s4941_s3 + $0x4] ss:$16 sps:$4 sm:$0xff]   ;;  %v3326_v11 = vld [vmem:[%s4941_s3 + $0x2c] ss:$16 sps:$4 sm:$0xff]  }
  0x23   :  { %537 = vmatprep.subr.bf16.mxu0 %v2893_v0  ;;  %578 = vmatprep.subr.bf16.mxu1 %v2895_v14  ;;  %v2942_v0 = vcombine.low %v80_v54, %v84_v56  ;;  %v3324_v14 = vld [vmem:[%s4941_s3 + $0x28] ss:$16 sps:$4 sm:$0xff]   ;;  %v3398_v56 = vld [vmem:[%s4941_s3 + $0x1ac] ss:$16 sps:$4 sm:$0xff]  }
  0x24   :  { %v3390_v54 = vld [vmem:[%s4941_s3 + $0x188] ss:$16 sps:$4 sm:$0xff]  }
  0x25   :  { %488 = vmatmul.mubr.bf16.vlgmr.msra.gmra.mrb[0].mxu0 %v3904_v1  ;;  %529 = vmatmul.mubr.bf16.vlgmr.msra.gmra.mrb[0].mxu1 %v3904_v1 }
  0x26   :  { %538 = vmatpush1.bf16.msra.mxu0 %v2892_v8  ;;  %569 = vmatprep.mubr.bf16.mxu0 %v3755_v6  ;;  %v3321_v8 = vld [vmem:[%s4941_s3 + $0x20] ss:$16 sps:$4 sm:$0xff]  }
  0x27   :  { %539 = vmatprep.subr.bf16.mxu0 %v2901_v10  ;;  %579 = vmatpush1.bf16.msra.mxu1 %v2894_v21  ;;  %v3318_v10 = vld [vmem:[%s4941_s3 + $0x8] ss:$16 sps:$4 sm:$0xff]  }
  0x28   :  { %610 = vmatprep.mubr.bf16.mxu1 %v3755_v6  ;;  %580 = vmatprep.subr.bf16.mxu1 %v2903_v22  ;;  %v75_v6 = vld [vmem:[%s4939_s1 + $0x170] sm:$0xff]  ;;  %v3336_v21 = vld [vmem:[%s4941_s3 + $0x68] ss:$16 sps:$4 sm:$0xff]   ;;  %v3344_v22 = vld [vmem:[%s4941_s3 + $0x8c] ss:$16 sps:$4 sm:$0xff]  }
  0x29   :  { %v2933_v41 = vcombine.high %v71_v35, %v75_v6  ;;  %v2932_v47 = vcombine.low %v71_v35, %v75_v6  ;;  %v3363_v35 = vld [vmem:[%s4941_s3 + $0x100] ss:$16 sps:$4 sm:$0xff]   ;;  %v3371_v6 = vld [vmem:[%s4941_s3 + $0x124] ss:$16 sps:$4 sm:$0xff]  }
  0x2a   :  { %540 = vmatpush1.bf16.msra.mxu0 %v2900_v16  ;;  %v3333_v16 = vld [vmem:[%s4941_s3 + $0x60] ss:$16 sps:$4 sm:$0xff]  }
  0x2b   :  { %541 = vmatprep.subr.bf16.mxu0 %v2909_v18  ;;  %581 = vmatpush1.bf16.msra.mxu1 %v2902_v29  ;;  %v3330_v18 = vld [vmem:[%s4941_s3 + $0x48] ss:$16 sps:$4 sm:$0xff]  }
  0x2c   :  { %582 = vmatprep.subr.bf16.mxu1 %v2911_v30  ;;  %v3348_v29 = vld [vmem:[%s4941_s3 + $0xa8] ss:$16 sps:$4 sm:$0xff]   ;;  %v3356_v30 = vld [vmem:[%s4941_s3 + $0xcc] ss:$16 sps:$4 sm:$0xff]  }
  0x2e   :  { %542 = vmatpush1.bf16.msra.mxu0 %v2908_v24  ;;  %v3353_v24 = vld [vmem:[%s4941_s3 + $0xc4] ss:$16 sps:$4 sm:$0xff]  }
  0x2f   :  { %543 = vmatprep.subr.bf16.mxu0 %v2917_v26  ;;  %583 = vmatpush1.bf16.msra.mxu1 %v2910_v36  ;;  %v3350_v26 = vld [vmem:[%s4941_s3 + $0xac] ss:$16 sps:$4 sm:$0xff]   ;;  %v3360_v36 = vld [vmem:[%s4941_s3 + $0xe8] ss:$16 sps:$4 sm:$0xff]  }
  0x30   :  { %584 = vmatprep.subr.bf16.mxu1 %v2919_v37  ;;  %v3368_v37 = vld [vmem:[%s4941_s3 + $0x10c] ss:$16 sps:$4 sm:$0xff]  }
  0x32   :  { %544 = vmatpush1.bf16.msra.mxu0 %v2916_v32  ;;  %v3365_v32 = vld [vmem:[%s4941_s3 + $0x104] ss:$16 sps:$4 sm:$0xff]  }
  0x33   :  { %545 = vmatprep.subr.bf16.mxu0 %v2925_v34  ;;  %585 = vmatpush1.bf16.msra.mxu1 %v2918_v44  ;;  %v3362_v34 = vld [vmem:[%s4941_s3 + $0xec] ss:$16 sps:$4 sm:$0xff]   ;;  %v3372_v44 = vld [vmem:[%s4941_s3 + $0x128] ss:$16 sps:$4 sm:$0xff]  }
  0x34   :  { %586 = vmatprep.subr.bf16.mxu1 %v2927_v45  ;;  %v3380_v45 = vld [vmem:[%s4941_s3 + $0x14c] ss:$16 sps:$4 sm:$0xff]  }
  0x36   :  { %546 = vmatpush1.bf16.msra.mxu0 %v2924_v39  ;;  %v3377_v39 = vld [vmem:[%s4941_s3 + $0x144] ss:$16 sps:$4 sm:$0xff]  }
  0x37   :  { %547 = vmatprep.subr.bf16.mxu0 %v2933_v41  ;;  %587 = vmatpush1.bf16.msra.mxu1 %v2926_v52  ;;  %v3374_v41 = vld [vmem:[%s4941_s3 + $0x12c] ss:$16 sps:$4 sm:$0xff]   ;;  %v3384_v52 = vld [vmem:[%s4941_s3 + $0x168] ss:$16 sps:$4 sm:$0xff]  }
  0x38   :  { %588 = vmatprep.subr.bf16.mxu1 %v2935_v53  ;;  %v3392_v53 = vld [vmem:[%s4941_s3 + $0x18c] ss:$16 sps:$4 sm:$0xff]  }
  0x3a   :  { %548 = vmatpush1.bf16.msra.mxu0 %v2932_v47  ;;  %v3389_v47 = vld [vmem:[%s4941_s3 + $0x184] ss:$16 sps:$4 sm:$0xff]  }
  0x3b   :  { %549 = vmatprep.subr.bf16.mxu0 %v2941_v49  ;;  %589 = vmatpush1.bf16.msra.mxu1 %v2934_v58  ;;  %v3386_v49 = vld [vmem:[%s4941_s3 + $0x16c] ss:$16 sps:$4 sm:$0xff]   ;;  %v3396_v58 = vld [vmem:[%s4941_s3 + $0x1a8] ss:$16 sps:$4 sm:$0xff]  }
  0x3c   :  { %590 = vmatprep.subr.bf16.mxu1 %v2943_v61  ;;  %v3407_v61 = vld [vmem:[%s4941_s3 + $0x1e4] ss:$16 sps:$4 sm:$0xff]  }
  0x3e   :  { %550 = vmatpush1.bf16.msra.mxu0 %v2940_v55  ;;  %v3393_v55 = vld [vmem:[%s4941_s3 + $0x1a0] ss:$16 sps:$4 sm:$0xff]  }
  0x3f   :  { %551 = vmatprep.subr.bf16.mxu0 %v2949_v57  ;;  %591 = vmatpush1.bf16.msra.mxu1 %v2942_v0  ;;  %v3401_v57 = vld [vmem:[%s4941_s3 + $0x1c4] ss:$16 sps:$4 sm:$0xff]   ;;  %v3410_v0 = vld [vmem:[%s4941_s3 + $0x1ec] ss:$16 sps:$4 sm:$0xff]  }
  0x40   :  { %592 = vmatprep.subr.bf16.mxu1 %v2951_v3  ;;  %v3408_v3 = vld [vmem:[%s4941_s3 + $0x1e8] ss:$16 sps:$4 sm:$0xff]  }
  0x42   :  { %552 = vmatpush1.bf16.msra.mxu0 %v2948_v63  ;;  %v3405_v63 = vld [vmem:[%s4941_s3 + $0x1e0] ss:$16 sps:$4 sm:$0xff]  }
  0x43   :  { %2193 = vmatprep.subr.bf16.mxu0 %v3317_v62  ;;  %593 = vmatpush1.bf16.msra.mxu1 %v2950_v7  ;;  %v3402_v62 = vld [vmem:[%s4941_s3 + $0x1c8] ss:$16 sps:$4 sm:$0xff]  }
  0x44   :  { %2357 = vmatprep.subr.bf16.mxu1 %v3320_v5 }
  0x45   :  { %570 = vmatmul.mubr.bf16.vlgmr.msra.gmra.mrb[4].mxu0 %v3904_v1 }
  0x46   :  { %2194 = vmatpush1.bf16.msra.mxu0 %v3315_v2  ;;  %611 = vmatmul.mubr.bf16.vlgmr.msra.gmra.mrb[4].mxu1 %v3904_v1  ;;  %v3338_v1 = vld [vmem:[%s4941_s3 + $0x6c] ss:$16 sps:$4 sm:$0xff]   ;;  %v3413_v2 = vld [vmem:[%s4941_s3 + $0x204] ss:$16 sps:$4 sm:$0xff]  }
  0x47   :  { %2195 = vmatprep.subr.bf16.mxu0 %v3323_v4  ;;  %2358 = vmatpush1.bf16.msra.mxu1 %v3318_v10  ;;  %v3416_v4 = vld [vmem:[%s4941_s3 + $0x20c] ss:$16 sps:$4 sm:$0xff]  }
  0x48   :  { %2359 = vmatprep.subr.bf16.mxu1 %v3326_v11 }
  0x4a   :  { %2196 = vmatpush1.bf16.msra.mxu0 %v3321_v8 }
  0x4b   :  { %2197 = vmatprep.subr.bf16.mxu0 %v3329_v9  ;;  %2360 = vmatpush1.bf16.msra.mxu1 %v3324_v14 }
  0x4c   :  { %2361 = vmatprep.subr.bf16.mxu1 %v3332_v15 }
  0x4e   :  { %2198 = vmatpush1.bf16.msra.mxu0 %v3327_v12 }
  0x4f   :  { %2199 = vmatprep.subr.bf16.mxu0 %v3335_v13  ;;  %2362 = vmatpush1.bf16.msra.mxu1 %v3330_v18 }
  0x50   :  { %2363 = vmatprep.subr.bf16.mxu1 %v3338_v1 }
  0x52   :  { %2200 = vmatpush1.bf16.msra.mxu0 %v3333_v16 }
  0x53   :  { %2201 = vmatprep.subr.bf16.mxu0 %v3341_v17  ;;  %2364 = vmatpush1.bf16.msra.mxu1 %v3336_v21 }
  0x54   :  { %2365 = vmatprep.subr.bf16.mxu1 %v3344_v22 }
  0x56   :  { %2202 = vmatpush1.bf16.msra.mxu0 %v3339_v19 }
  0x57   :  { %2203 = vmatprep.subr.bf16.mxu0 %v3347_v20  ;;  %2366 = vmatpush1.bf16.msra.mxu1 %v3342_v25 }
  0x58   :  { %2367 = vmatprep.subr.bf16.mxu1 %v3350_v26 }
  0x5a   :  { %2204 = vmatpush1.bf16.msra.mxu0 %v3345_v23 }
  0x5b   :  { %2205 = vmatprep.subr.bf16.mxu0 %v3353_v24  ;;  %2368 = vmatpush1.bf16.msra.mxu1 %v3348_v29 }
  0x5c   :  { %2369 = vmatprep.subr.bf16.mxu1 %v3356_v30 }
  0x5e   :  { %2206 = vmatpush1.bf16.msra.mxu0 %v3351_v27 }
  0x5f   :  { %2207 = vmatprep.subr.bf16.mxu0 %v3359_v28  ;;  %2370 = vmatpush1.bf16.msra.mxu1 %v3354_v33 }
  0x60   :  { %2371 = vmatprep.subr.bf16.mxu1 %v3362_v34 }
  0x62   :  { %2208 = vmatpush1.bf16.msra.mxu0 %v3357_v31 }
  0x63   :  { %2209 = vmatprep.subr.bf16.mxu0 %v3365_v32  ;;  %2372 = vmatpush1.bf16.msra.mxu1 %v3360_v36 }
  0x64   :  { %2373 = vmatprep.subr.bf16.mxu1 %v3368_v37 }
  0x66   :  { %2210 = vmatpush1.bf16.msra.mxu0 %v3363_v35 }
  0x67   :  { %2211 = vmatprep.subr.bf16.mxu0 %v3371_v6  ;;  %2374 = vmatpush1.bf16.msra.mxu1 %v3366_v40 }
  0x68   :  { %2375 = vmatprep.subr.bf16.mxu1 %v3374_v41 }
  0x6a   :  { %2212 = vmatpush1.bf16.msra.mxu0 %v3369_v38 }
  0x6b   :  { %2213 = vmatprep.subr.bf16.mxu0 %v3377_v39  ;;  %2376 = vmatpush1.bf16.msra.mxu1 %v3372_v44 }
  0x6c   :  { %2377 = vmatprep.subr.bf16.mxu1 %v3380_v45 }
  0x6e   :  { %2214 = vmatpush1.bf16.msra.mxu0 %v3375_v42 }
  0x6f   :  { %2215 = vmatprep.subr.bf16.mxu0 %v3383_v43  ;;  %2378 = vmatpush1.bf16.msra.mxu1 %v3378_v48 }
  0x70   :  { %2379 = vmatprep.subr.bf16.mxu1 %v3386_v49 }
  0x72   :  { %2216 = vmatpush1.bf16.msra.mxu0 %v3381_v46 }
  0x73   :  { %2217 = vmatprep.subr.bf16.mxu0 %v3389_v47  ;;  %2380 = vmatpush1.bf16.msra.mxu1 %v3384_v52 }
  0x74   :  { %2381 = vmatprep.subr.bf16.mxu1 %v3392_v53 }
  0x76   :  { %2218 = vmatpush1.bf16.msra.mxu0 %v3387_v50 }
  0x77   :  { %2219 = vmatprep.subr.bf16.mxu0 %v3395_v51  ;;  %2382 = vmatpush1.bf16.msra.mxu1 %v3390_v54 }
  0x78   :  { %2383 = vmatprep.subr.bf16.mxu1 %v3398_v56 }
  0x7a   :  { %2220 = vmatpush1.bf16.msra.mxu0 %v3393_v55 }
  0x7b   :  { %2221 = vmatprep.subr.bf16.mxu0 %v3401_v57  ;;  %2384 = vmatpush1.bf16.msra.mxu1 %v3396_v58 }
  0x7c   :  { %2385 = vmatprep.subr.bf16.mxu1 %v3404_v60 }
  0x7e   :  { %2222 = vmatpush1.bf16.msra.mxu0 %v3399_v59 }
  0x7f   :  { %2223 = vmatprep.subr.bf16.mxu0 %v3407_v61  ;;  %2386 = vmatpush1.bf16.msra.mxu1 %v3402_v62 }
  0x80   :  { %2387 = vmatprep.subr.bf16.mxu1 %v3410_v0 }
  0x82   :  { %2224 = vmatpush1.bf16.msra.mxu0 %v3405_v63 }
  0x83   :  { %2234 = vmatprep.subr.bf16.mxu0 %v3413_v2  ;;  %2388 = vmatpush1.bf16.msra.mxu1 %v3408_v3 }
  0x84   :  { %2398 = vmatprep.subr.bf16.mxu1 %v3416_v4 }
  0x85   :  { %12 = vsyncpa [#allocation3], 0  ;;  %v95_v5 = vlaneseq  ;;  %v4206_v9 = vld [vmem:[%s4940_s2] sm:$0xff]  ;;  %v3414_v24 = vld [vmem:[%s4941_s3 + $0x208] ss:$16 sps:$4 sm:$0xff]   ;;  %s3756_s21 = smov [#allocation2]  }
  0x86   :  { %v3411_v23 = vld [vmem:[%s4941_s3 + $0x200] ss:$16 sps:$4 sm:$0xff]   ;;  %v3419_v27 = vld [vmem:[%s4941_s3 + $0x224] ss:$16 sps:$4 sm:$0xff]   ;;  %v3422_v28 = vld [vmem:[%s4941_s3 + $0x22c] ss:$16 sps:$4 sm:$0xff]  }
  0x87   :  { %v4200_v7 = vshrl.u32 %v95_v5, 7  ;;  %v3417_v33 = vld [vmem:[%s4941_s3 + $0x220] ss:$16 sps:$4 sm:$0xff]   ;;  %v3420_v34 = vld [vmem:[%s4941_s3 + $0x228] ss:$16 sps:$4 sm:$0xff]   ;;  %s2880_s22 = sshll.u32 %s3756_s21, 4  ;;  %s2881_s22 = int_to_ptr.vmem [resolvable:$true] %s2880_s22 }
  0x88   :  { %v3425_v6 = vld [vmem:[%s4941_s3 + $0x244] ss:$16 sps:$4 sm:$0xff]   ;;  %v3428_v36 = vld [vmem:[%s4941_s3 + $0x24c] ss:$16 sps:$4 sm:$0xff]   ;;  %v3423_v38 = vld [vmem:[%s4941_s3 + $0x240] ss:$16 sps:$4 sm:$0xff]   ;;  %p3736_p1 = scmp.lt.s32.totalorder %s2881_s22, %s2881_s22 }
  0x89   :  { %v97_v8 = vsub.s32 0, %v4200_v7  ;;  %v101_v10 = vsub.s32 1, %v4200_v7  ;;  %v109_v14 = vsub.s32 3, %v4200_v7  ;;  %v3426_v39 = vld [vmem:[%s4941_s3 + $0x248] ss:$16 sps:$4 sm:$0xff]   ;;  %s3731_s23 = scalar_lea.vmem %s2881_s22, 128 }
  0x8a   :  { %v3431_v40 = vld [vmem:[%s4941_s3 + $0x264] ss:$16 sps:$4 sm:$0xff]   ;;  %v3434_v41 = vld [vmem:[%s4941_s3 + $0x26c] ss:$16 sps:$4 sm:$0xff]   ;;  %v3429_v42 = vld [vmem:[%s4941_s3 + $0x260] ss:$16 sps:$4 sm:$0xff]   ;;  %p3732_p0 = scmp.ne.s32.totalorder %s2881_s22, %s3731_s23  ;;  %p3737_p2 = scmp.lt.s32.totalorder %s3731_s23, %s3731_s23 }
  0x8b   :  { %v98_v11 = vrot.slane %v4206_v9, %v97_v8  ;;  %v102_v12 = vrot.slane %v4206_v9, %v101_v10  ;;  %v110_v21 = vrot.slane %v4206_v9, %v109_v14  ;;  %v3432_v43 = vld [vmem:[%s4941_s3 + $0x268] ss:$16 sps:$4 sm:$0xff]   ;;  %v3437_v44 = vld [vmem:[%s4941_s3 + $0x284] ss:$16 sps:$4 sm:$0xff]   ;;  %v3440_v45 = vld [vmem:[%s4941_s3 + $0x28c] ss:$16 sps:$4 sm:$0xff]  }
  0x8c   :  { %v3435_v46 = vld [vmem:[%s4941_s3 + $0x280] ss:$16 sps:$4 sm:$0xff]   ;;  %v3438_v47 = vld [vmem:[%s4941_s3 + $0x288] ss:$16 sps:$4 sm:$0xff]   ;;  %v3443_v48 = vld [vmem:[%s4941_s3 + $0x2a4] ss:$16 sps:$4 sm:$0xff]   ;;  %p3738_p3 = por %p3737_p2, %p3736_p1 }
  0x8d   :  { %v3446_v49 = vld [vmem:[%s4941_s3 + $0x2ac] ss:$16 sps:$4 sm:$0xff]   ;;  %v3441_v50 = vld [vmem:[%s4941_s3 + $0x2a0] ss:$16 sps:$4 sm:$0xff]   ;;  %v3444_v51 = vld [vmem:[%s4941_s3 + $0x2a8] ss:$16 sps:$4 sm:$0xff]  }
  0x8e   :  { %v3449_v52 = vld [vmem:[%s4941_s3 + $0x2c4] ss:$16 sps:$4 sm:$0xff]   ;;  %v3452_v53 = vld [vmem:[%s4941_s3 + $0x2cc] ss:$16 sps:$4 sm:$0xff]   ;;  %v3447_v54 = vld [vmem:[%s4941_s3 + $0x2c0] ss:$16 sps:$4 sm:$0xff]   ;;  %p3739_p4 = pnand %p3738_p3, %p3732_p0 }
  0x8f   :  { %v3450_v55 = vld [vmem:[%s4941_s3 + $0x2c8] ss:$16 sps:$4 sm:$0xff]   ;;  %v3455_v56 = vld [vmem:[%s4941_s3 + $0x2e4] ss:$16 sps:$4 sm:$0xff]   ;;  %v3458_v57 = vld [vmem:[%s4941_s3 + $0x2ec] ss:$16 sps:$4 sm:$0xff]  }
  0x90   :  { %v3453_v60 = vld [vmem:[%s4941_s3 + $0x2e0] ss:$16 sps:$4 sm:$0xff]   ;;  %v3456_v61 = vld [vmem:[%s4941_s3 + $0x2e8] ss:$16 sps:$4 sm:$0xff]   ;;  %v3461_v63 = vld [vmem:[%s4941_s3 + $0x304] ss:$16 sps:$4 sm:$0xff]  }
  0x91   :  { %v3464_v0 = vld [vmem:[%s4941_s3 + $0x30c] ss:$16 sps:$4 sm:$0xff]   ;;  %v3459_v3 = vld [vmem:[%s4941_s3 + $0x300] ss:$16 sps:$4 sm:$0xff]   ;;  %v3462_v4 = vld [vmem:[%s4941_s3 + $0x308] ss:$16 sps:$4 sm:$0xff]  }
  0xf8   :  { %v489_v13 = vpop.f32.mrb[0].mxu0  ;;  %v4225_v25 = vpop.f32.mrb[0].mxu1 }
  0xf9   :  { %v490_v15 = vadd.f32 %v489_v13, %v98_v11  ;;  %v491_v16 = vpop.f32.mrb[1].mxu0  ;;  %v532_v29 = vpop.f32.mrb[1].mxu1  ;;  %v3467_v11 = vld [vmem:[%s4941_s3 + $0x324] ss:$16 sps:$4 sm:$0xff]  }
  0xfa   :  { %v492_v17 = vadd.f32 %v491_v16, %v102_v12  ;;  %v493_v18 = vpop.f32.mrb[2].mxu0  ;;  %v533_v30 = vadd.f32 %v532_v29, %v110_v21  ;;  %v534_v31 = vpop.f32.mrb[2].mxu1  ;;  %v3470_v12 = vld [vmem:[%s4941_s3 + $0x32c] ss:$16 sps:$4 sm:$0xff]   ;;  %v3474_v21 = vld [vmem:[%s4941_s3 + $0x348] ss:$16 sps:$4 sm:$0xff]  }
  0xfb   :  { %v619_v1 = vmax.f32 %v490_v15, 0.0  ;;  %v494_v19 = vpop.f32.mrb[3].mxu0  ;;  %v535_v32 = vpop.f32.mrb[3].mxu1  ;;  %v3468_v18 = vld [vmem:[%s4941_s3 + $0x328] ss:$16 sps:$4 sm:$0xff]   ;;  %v105_v29 = vsub.s32 2, %v4200_v7 }
  0xfc   :  { %v620_v20 = vmax.f32 %v492_v17, 0.0  ;;  %v622_v35 = vmax.f32 %v533_v30, 0.0  ;;  %v3465_v17 = vld [vmem:[%s4941_s3 + $0x320] ss:$16 sps:$4 sm:$0xff]   ;;  %v3476_v19 = vld [vmem:[%s4941_s3 + $0x34c] ss:$16 sps:$4 sm:$0xff]  }
  0xfd   :  { %v627_v26 = vpack.c.bf16 %v619_v1, %v619_v1  ;;  %v3473_v1 = vld [vmem:[%s4941_s3 + $0x344] ss:$16 sps:$4 sm:$0xff]   ;;  %v3483_v30 = vld [vmem:[%s4941_s3 + $0x380] ss:$16 sps:$4 sm:$0xff]   ;;  %v3486_v31 = vld [vmem:[%s4941_s3 + $0x388] ss:$16 sps:$4 sm:$0xff]  }
  0xfe   :  { %v628_v22 = vpack.c.bf16 %v620_v20, %v620_v20  ;;  %v630_v37 = vpack.c.bf16 %v622_v35, %v622_v35  ;;  %v3471_v20 = vld [vmem:[%s4941_s3 + $0x340] ss:$16 sps:$4 sm:$0xff]   ;;  %v3491_v32 = vld [vmem:[%s4941_s3 + $0x3a4] ss:$16 sps:$4 sm:$0xff]   ;;  %v106_v35 = vrot.slane %v4206_v9, %v105_v29 }
 0x100   :  { %2225 = vmatprep.mubr.bf16.mxu0 %v628_v22  ;;  %2389 = vmatprep.mubr.bf16.mxu1 %v628_v22  ;;  %v3479_v22 = vld [vmem:[%s4941_s3 + $0x364] ss:$16 sps:$4 sm:$0xff]  }
 0x101   :  { %2226 = vmatmul.mubr.bf16.vlgmr.msra.gmra.mrb[8].mxu0 %v627_v26  ;;  %2390 = vmatmul.mubr.bf16.vlgmr.msra.gmra.mrb[8].mxu1 %v627_v26  ;;  %v3480_v26 = vld [vmem:[%s4941_s3 + $0x368] ss:$16 sps:$4 sm:$0xff]  }
 0x102   :  { %2235 = vmatpush1.bf16.msra.mxu0 %v3411_v23  ;;  %2399 = vmatpush1.bf16.msra.mxu1 %v3414_v24  ;;  %v3482_v23 = vld [vmem:[%s4941_s3 + $0x36c] ss:$16 sps:$4 sm:$0xff]   ;;  %v3477_v24 = vld [vmem:[%s4941_s3 + $0x360] ss:$16 sps:$4 sm:$0xff]  }
 0x103   :  { %2236 = vmatprep.subr.bf16.mxu0 %v3419_v27  ;;  %2400 = vmatprep.subr.bf16.mxu1 %v3422_v28  ;;  %v3485_v27 = vld [vmem:[%s4941_s3 + $0x384] ss:$16 sps:$4 sm:$0xff]   ;;  %v3488_v28 = vld [vmem:[%s4941_s3 + $0x38c] ss:$16 sps:$4 sm:$0xff]  }
 0x104   :  { %2266 = vmatprep.mubr.bf16.mxu0 %v630_v37  ;;  %2430 = vmatprep.mubr.bf16.mxu1 %v630_v37  ;;  %v3497_v37 = vld [vmem:[%s4941_s3 + $0x3c4] ss:$16 sps:$4 sm:$0xff]  }
 0x106   :  { %2237 = vmatpush1.bf16.msra.mxu0 %v3417_v33  ;;  %2401 = vmatpush1.bf16.msra.mxu1 %v3420_v34  ;;  %v3494_v33 = vld [vmem:[%s4941_s3 + $0x3ac] ss:$16 sps:$4 sm:$0xff]   ;;  %v117_v34 = vsub.s32 5, %v4200_v7 }
 0x107   :  { %2238 = vmatprep.subr.bf16.mxu0 %v3425_v6  ;;  %2402 = vmatprep.subr.bf16.mxu1 %v3428_v36  ;;  %v3489_v6 = vld [vmem:[%s4941_s3 + $0x3a0] ss:$16 sps:$4 sm:$0xff]   ;;  %v3492_v36 = vld [vmem:[%s4941_s3 + $0x3a8] ss:$16 sps:$4 sm:$0xff]  }
 0x10a   :  { %2239 = vmatpush1.bf16.msra.mxu0 %v3423_v38  ;;  %2403 = vmatpush1.bf16.msra.mxu1 %v3426_v39  ;;  %v3500_v38 = vld [vmem:[%s4941_s3 + $0x3cc] ss:$16 sps:$4 sm:$0xff]   ;;  %v118_v39 = vrot.slane %v4206_v9, %v117_v34  ;;  %v3563_v34 = vld [vmem:[%s4941_s3 + $0x524] ss:$16 sps:$4 sm:$0xff]  }
 0x10b   :  { %2240 = vmatprep.subr.bf16.mxu0 %v3431_v40  ;;  %2404 = vmatprep.subr.bf16.mxu1 %v3434_v41  ;;  %v531_v40 = vadd.f32 %v4225_v25, %v106_v35  ;;  %v3495_v41 = vld [vmem:[%s4941_s3 + $0x3c0] ss:$16 sps:$4 sm:$0xff]   ;;  %v3506_v25 = vld [vmem:[%s4941_s3 + $0x3ec] ss:$16 sps:$4 sm:$0xff]  }
 0x10c   :  { %v3566_v35 = vld [vmem:[%s4941_s3 + $0x52c] ss:$16 sps:$4 sm:$0xff]  }
 0x10e   :  { %2241 = vmatpush1.bf16.msra.mxu0 %v3429_v42  ;;  %2405 = vmatpush1.bf16.msra.mxu1 %v3432_v43  ;;  %v3498_v42 = vld [vmem:[%s4941_s3 + $0x3c8] ss:$16 sps:$4 sm:$0xff]   ;;  %v3503_v43 = vld [vmem:[%s4941_s3 + $0x3e4] ss:$16 sps:$4 sm:$0xff]  }
 0x10f   :  { %2242 = vmatprep.subr.bf16.mxu0 %v3437_v44  ;;  %2406 = vmatprep.subr.bf16.mxu1 %v3440_v45  ;;  %v621_v45 = vmax.f32 %v531_v40, 0.0  ;;  %v3570_v40 = vld [vmem:[%s4941_s3 + $0x548] ss:$16 sps:$4 sm:$0xff]  }
 0x112   :  { %2243 = vmatpush1.bf16.msra.mxu0 %v3435_v46  ;;  %2407 = vmatpush1.bf16.msra.mxu1 %v3438_v47  ;;  %v3501_v46 = vld [vmem:[%s4941_s3 + $0x3e0] ss:$16 sps:$4 sm:$0xff]   ;;  %v3504_v47 = vld [vmem:[%s4941_s3 + $0x3e8] ss:$16 sps:$4 sm:$0xff]  }
 0x113   :  { %2244 = vmatprep.subr.bf16.mxu0 %v3443_v48  ;;  %2408 = vmatprep.subr.bf16.mxu1 %v3446_v49  ;;  %v3509_v48 = vld [vmem:[%s4941_s3 + $0x404] ss:$16 sps:$4 sm:$0xff]   ;;  %v3512_v49 = vld [vmem:[%s4941_s3 + $0x40c] ss:$16 sps:$4 sm:$0xff]  }
 0x116   :  { %2245 = vmatpush1.bf16.msra.mxu0 %v3441_v50  ;;  %2409 = vmatpush1.bf16.msra.mxu1 %v3444_v51  ;;  %v629_v51 = vpack.c.bf16 %v621_v45, %v621_v45  ;;  %v3584_v45 = vld [vmem:[%s4941_s3 + $0x58c] ss:$16 sps:$4 sm:$0xff]  }
 0x117   :  { %2246 = vmatprep.subr.bf16.mxu0 %v3449_v52  ;;  %2410 = vmatprep.subr.bf16.mxu1 %v3452_v53  ;;  %v3507_v52 = vld [vmem:[%s4941_s3 + $0x400] ss:$16 sps:$4 sm:$0xff]   ;;  %v3510_v53 = vld [vmem:[%s4941_s3 + $0x408] ss:$16 sps:$4 sm:$0xff]  }
 0x118   :  { %v4305_v58 = vpop.f32.mrb[4].mxu0 }
 0x119   :  { %v4307_v59 = vpop.f32.mrb[5].mxu0  ;;  %v4327_v5 = vpop.f32.mrb[4].mxu1 }
 0x11a   :  { %2247 = vmatpush1.bf16.msra.mxu0 %v3447_v54  ;;  %2411 = vmatpush1.bf16.msra.mxu1 %v3450_v55  ;;  %v575_v62 = vpop.f32.mrb[6].mxu0  ;;  %v4335_v13 = vpop.f32.mrb[5].mxu1  ;;  %v574_v44 = vadd.f32 %v4307_v59, %v118_v39  ;;  %v3515_v54 = vld [vmem:[%s4941_s3 + $0x424] ss:$16 sps:$4 sm:$0xff]   ;;  %v3518_v55 = vld [vmem:[%s4941_s3 + $0x42c] ss:$16 sps:$4 sm:$0xff]  }
 0x11b   :  { %2248 = vmatprep.subr.bf16.mxu0 %v3455_v56  ;;  %2412 = vmatprep.subr.bf16.mxu1 %v3458_v57  ;;  %v576_v2 = vpop.f32.mrb[7].mxu0  ;;  %v616_v15 = vpop.f32.mrb[6].mxu1  ;;  %v3513_v57 = vld [vmem:[%s4941_s3 + $0x420] ss:$16 sps:$4 sm:$0xff]   ;;  %v3516_v59 = vld [vmem:[%s4941_s3 + $0x428] ss:$16 sps:$4 sm:$0xff]  }
 0x11c   :  { %v617_v16 = vpop.f32.mrb[7].mxu1  ;;  %v624_v50 = vmax.f32 %v574_v44, 0.0  ;;  %v3519_v62 = vld [vmem:[%s4941_s3 + $0x440] ss:$16 sps:$4 sm:$0xff]   ;;  %v3530_v2 = vld [vmem:[%s4941_s3 + $0x46c] ss:$16 sps:$4 sm:$0xff]  }
 0x11d   :  { %v3531_v15 = vld [vmem:[%s4941_s3 + $0x480] ss:$16 sps:$4 sm:$0xff]   ;;  %v3534_v16 = vld [vmem:[%s4941_s3 + $0x488] ss:$16 sps:$4 sm:$0xff]   ;;  %v3581_v44 = vld [vmem:[%s4941_s3 + $0x584] ss:$16 sps:$4 sm:$0xff]  }
 0x11e   :  { %2249 = vmatpush1.bf16.msra.mxu0 %v3453_v60  ;;  %2413 = vmatpush1.bf16.msra.mxu1 %v3456_v61  ;;  %v632_v56 = vpack.c.bf16 %v624_v50, %v624_v50  ;;  %v3521_v60 = vld [vmem:[%s4941_s3 + $0x444] ss:$16 sps:$4 sm:$0xff]   ;;  %v3524_v61 = vld [vmem:[%s4941_s3 + $0x44c] ss:$16 sps:$4 sm:$0xff]   ;;  %v3567_v39 = vld [vmem:[%s4941_s3 + $0x540] ss:$16 sps:$4 sm:$0xff]  }
 0x11f   :  { %2250 = vmatprep.subr.bf16.mxu0 %v3461_v63  ;;  %2414 = vmatprep.subr.bf16.mxu1 %v3464_v0  ;;  %v3522_v63 = vld [vmem:[%s4941_s3 + $0x448] ss:$16 sps:$4 sm:$0xff]   ;;  %v3527_v0 = vld [vmem:[%s4941_s3 + $0x464] ss:$16 sps:$4 sm:$0xff]   ;;  %v3590_v50 = vld [vmem:[%s4941_s3 + $0x5ac] ss:$16 sps:$4 sm:$0xff]  }
 0x122   :  { %2251 = vmatpush1.bf16.msra.mxu0 %v3459_v3  ;;  %2415 = vmatpush1.bf16.msra.mxu1 %v3462_v4  ;;  %v3525_v3 = vld [vmem:[%s4941_s3 + $0x460] ss:$16 sps:$4 sm:$0xff]   ;;  %v3528_v4 = vld [vmem:[%s4941_s3 + $0x468] ss:$16 sps:$4 sm:$0xff]  }
 0x123   :  { %2252 = vmatprep.subr.bf16.mxu0 %v3467_v11  ;;  %2416 = vmatprep.subr.bf16.mxu1 %v3470_v12  ;;  %v3533_v11 = vld [vmem:[%s4941_s3 + $0x484] ss:$16 sps:$4 sm:$0xff]   ;;  %v3536_v12 = vld [vmem:[%s4941_s3 + $0x48c] ss:$16 sps:$4 sm:$0xff]  }
 0x126   :  { %2253 = vmatpush1.bf16.msra.mxu0 %v3465_v17  ;;  %2417 = vmatpush1.bf16.msra.mxu1 %v3468_v18  ;;  %v3539_v17 = vld [vmem:[%s4941_s3 + $0x4a4] ss:$16 sps:$4 sm:$0xff]   ;;  %v3542_v18 = vld [vmem:[%s4941_s3 + $0x4ac] ss:$16 sps:$4 sm:$0xff]  }
 0x127   :  { %2254 = vmatprep.subr.bf16.mxu0 %v3473_v1  ;;  %2418 = vmatprep.subr.bf16.mxu1 %v3476_v19  ;;  %v3537_v1 = vld [vmem:[%s4941_s3 + $0x4a0] ss:$16 sps:$4 sm:$0xff]   ;;  %v3540_v19 = vld [vmem:[%s4941_s3 + $0x4a8] ss:$16 sps:$4 sm:$0xff]  }
 0x12a   :  { %2255 = vmatpush1.bf16.msra.mxu0 %v3471_v20  ;;  %2419 = vmatpush1.bf16.msra.mxu1 %v3474_v21  ;;  %v3545_v20 = vld [vmem:[%s4941_s3 + $0x4c4] ss:$16 sps:$4 sm:$0xff]   ;;  %v3548_v21 = vld [vmem:[%s4941_s3 + $0x4cc] ss:$16 sps:$4 sm:$0xff]  }
 0x12b   :  { %2256 = vmatprep.subr.bf16.mxu0 %v3479_v22  ;;  %2420 = vmatprep.subr.bf16.mxu1 %v3482_v23  ;;  %v3543_v22 = vld [vmem:[%s4941_s3 + $0x4c0] ss:$16 sps:$4 sm:$0xff]   ;;  %v3546_v23 = vld [vmem:[%s4941_s3 + $0x4c8] ss:$16 sps:$4 sm:$0xff]  }
 0x12e   :  { %2257 = vmatpush1.bf16.msra.mxu0 %v3477_v24  ;;  %2421 = vmatpush1.bf16.msra.mxu1 %v3480_v26  ;;  %v3551_v24 = vld [vmem:[%s4941_s3 + $0x4e4] ss:$16 sps:$4 sm:$0xff]   ;;  %v3554_v26 = vld [vmem:[%s4941_s3 + $0x4ec] ss:$16 sps:$4 sm:$0xff]  }
 0x12f   :  { %2258 = vmatprep.subr.bf16.mxu0 %v3485_v27  ;;  %2422 = vmatprep.subr.bf16.mxu1 %v3488_v28  ;;  %v3549_v27 = vld [vmem:[%s4941_s3 + $0x4e0] ss:$16 sps:$4 sm:$0xff]   ;;  %v3552_v28 = vld [vmem:[%s4941_s3 + $0x4e8] ss:$16 sps:$4 sm:$0xff]  }
 0x132   :  { %2259 = vmatpush1.bf16.msra.mxu0 %v3483_v30  ;;  %2423 = vmatpush1.bf16.msra.mxu1 %v3486_v31  ;;  %v3557_v30 = vld [vmem:[%s4941_s3 + $0x504] ss:$16 sps:$4 sm:$0xff]   ;;  %v3560_v31 = vld [vmem:[%s4941_s3 + $0x50c] ss:$16 sps:$4 sm:$0xff]  }
 0x133   :  { %2260 = vmatprep.subr.bf16.mxu0 %v3491_v32  ;;  %2424 = vmatprep.subr.bf16.mxu1 %v3494_v33  ;;  %v3555_v32 = vld [vmem:[%s4941_s3 + $0x500] ss:$16 sps:$4 sm:$0xff]   ;;  %v3558_v33 = vld [vmem:[%s4941_s3 + $0x508] ss:$16 sps:$4 sm:$0xff]  }
 0x136   :  { %2261 = vmatpush1.bf16.msra.mxu0 %v3489_v6  ;;  %2425 = vmatpush1.bf16.msra.mxu1 %v3492_v36  ;;  %v3561_v6 = vld [vmem:[%s4941_s3 + $0x520] ss:$16 sps:$4 sm:$0xff]   ;;  %v3564_v36 = vld [vmem:[%s4941_s3 + $0x528] ss:$16 sps:$4 sm:$0xff]  }
 0x137   :  { %2262 = vmatprep.subr.bf16.mxu0 %v3497_v37  ;;  %2426 = vmatprep.subr.bf16.mxu1 %v3500_v38  ;;  %v3569_v37 = vld [vmem:[%s4941_s3 + $0x544] ss:$16 sps:$4 sm:$0xff]   ;;  %v3572_v38 = vld [vmem:[%s4941_s3 + $0x54c] ss:$16 sps:$4 sm:$0xff]  }
 0x13a   :  { %2263 = vmatpush1.bf16.msra.mxu0 %v3495_v41  ;;  %2427 = vmatpush1.bf16.msra.mxu1 %v3498_v42  ;;  %v3575_v41 = vld [vmem:[%s4941_s3 + $0x564] ss:$16 sps:$4 sm:$0xff]   ;;  %v3578_v42 = vld [vmem:[%s4941_s3 + $0x56c] ss:$16 sps:$4 sm:$0xff]  }
 0x13b   :  { %2264 = vmatprep.subr.bf16.mxu0 %v3503_v43  ;;  %2428 = vmatprep.subr.bf16.mxu1 %v3506_v25  ;;  %v3573_v43 = vld [vmem:[%s4941_s3 + $0x560] ss:$16 sps:$4 sm:$0xff]   ;;  %v3576_v25 = vld [vmem:[%s4941_s3 + $0x568] ss:$16 sps:$4 sm:$0xff]  }
 0x13e   :  { %2265 = vmatpush1.bf16.msra.mxu0 %v3501_v46  ;;  %2429 = vmatpush1.bf16.msra.mxu1 %v3504_v47  ;;  %v113_v46 = vsub.s32 4, %v4200_v7  ;;  %v3579_v47 = vld [vmem:[%s4941_s3 + $0x580] ss:$16 sps:$4 sm:$0xff]  }
 0x13f   :  { %2275 = vmatprep.subr.bf16.mxu0 %v3509_v48  ;;  %2439 = vmatprep.subr.bf16.mxu1 %v3512_v49  ;;  %v3582_v48 = vld [vmem:[%s4941_s3 + $0x588] ss:$16 sps:$4 sm:$0xff]   ;;  %v3587_v49 = vld [vmem:[%s4941_s3 + $0x5a4] ss:$16 sps:$4 sm:$0xff]  }
 0x141   :  { %2267 = vmatmul.mubr.bf16.vlgmr.msra.gmra.mrb[8].mxu0 %v629_v51  ;;  %2431 = vmatmul.mubr.bf16.vlgmr.msra.gmra.mrb[8].mxu1 %v629_v51  ;;  %v125_v51 = vsub.s32 7, %v4200_v7 }
 0x142   :  { %2276 = vmatpush1.bf16.msra.mxu0 %v3507_v52  ;;  %2440 = vmatpush1.bf16.msra.mxu1 %v3510_v53  ;;  %v114_v52 = vrot.slane %v4206_v9, %v113_v46  ;;  %v3585_v53 = vld [vmem:[%s4941_s3 + $0x5a0] ss:$16 sps:$4 sm:$0xff]   ;;  %v3656_v46 = vld [vmem:[%s4941_s3 + $0x70c] ss:$16 sps:$4 sm:$0xff]  }
 0x143   :  { %2277 = vmatprep.subr.bf16.mxu0 %v3515_v54  ;;  %2441 = vmatprep.subr.bf16.mxu1 %v3518_v55  ;;  %v3588_v54 = vld [vmem:[%s4941_s3 + $0x5a8] ss:$16 sps:$4 sm:$0xff]   ;;  %v3593_v55 = vld [vmem:[%s4941_s3 + $0x5c4] ss:$16 sps:$4 sm:$0xff]  }
 0x144   :  { %2307 = vmatprep.mubr.bf16.mxu0 %v632_v56  ;;  %2471 = vmatprep.mubr.bf16.mxu1 %v632_v56  ;;  %v3596_v56 = vld [vmem:[%s4941_s3 + $0x5cc] ss:$16 sps:$4 sm:$0xff]  }
 0x146   :  { %2278 = vmatpush1.bf16.msra.mxu0 %v3513_v57  ;;  %2442 = vmatpush1.bf16.msra.mxu1 %v3516_v59  ;;  %v126_v57 = vrot.slane %v4206_v9, %v125_v51  ;;  %v572_v59 = vadd.f32 %v4305_v58, %v114_v52  ;;  %v3602_v58 = vld [vmem:[%s4941_s3 + $0x5ec] ss:$16 sps:$4 sm:$0xff]   ;;  %v3657_v51 = vld [vmem:[%s4941_s3 + $0x720] ss:$16 sps:$4 sm:$0xff]   ;;  %v3660_v52 = vld [vmem:[%s4941_s3 + $0x728] ss:$16 sps:$4 sm:$0xff]  }
 0x147   :  { %2279 = vmatprep.subr.bf16.mxu0 %v3521_v60  ;;  %2443 = vmatprep.subr.bf16.mxu1 %v3524_v61  ;;  %v3591_v60 = vld [vmem:[%s4941_s3 + $0x5c0] ss:$16 sps:$4 sm:$0xff]   ;;  %v3594_v61 = vld [vmem:[%s4941_s3 + $0x5c8] ss:$16 sps:$4 sm:$0xff]  }
 0x14a   :  { %2280 = vmatpush1.bf16.msra.mxu0 %v3519_v62  ;;  %2444 = vmatpush1.bf16.msra.mxu1 %v3522_v63  ;;  %v3599_v62 = vld [vmem:[%s4941_s3 + $0x5e4] ss:$16 sps:$4 sm:$0xff]   ;;  %v615_v63 = vadd.f32 %v4335_v13, %v126_v57  ;;  %v3608_v13 = vld [vmem:[%s4941_s3 + $0x60c] ss:$16 sps:$4 sm:$0xff]  }
 0x14b   :  { %2281 = vmatprep.subr.bf16.mxu0 %v3527_v0  ;;  %2445 = vmatprep.subr.bf16.mxu1 %v3530_v2  ;;  %v623_v0 = vmax.f32 %v572_v59, 0.0  ;;  %v3597_v2 = vld [vmem:[%s4941_s3 + $0x5e0] ss:$16 sps:$4 sm:$0xff]   ;;  %v3671_v57 = vld [vmem:[%s4941_s3 + $0x764] ss:$16 sps:$4 sm:$0xff]  }
 0x14c   :  { %v3674_v59 = vld [vmem:[%s4941_s3 + $0x76c] ss:$16 sps:$4 sm:$0xff]  }
 0x14e   :  { %2282 = vmatpush1.bf16.msra.mxu0 %v3525_v3  ;;  %2446 = vmatpush1.bf16.msra.mxu1 %v3528_v4  ;;  %v3600_v3 = vld [vmem:[%s4941_s3 + $0x5e8] ss:$16 sps:$4 sm:$0xff]   ;;  %v3605_v4 = vld [vmem:[%s4941_s3 + $0x604] ss:$16 sps:$4 sm:$0xff]  }
 0x14f   :  { %2283 = vmatprep.subr.bf16.mxu0 %v3533_v11  ;;  %2447 = vmatprep.subr.bf16.mxu1 %v3536_v12  ;;  %v626_v11 = vmax.f32 %v615_v63, 0.0  ;;  %v631_v12 = vpack.c.bf16 %v623_v0, %v623_v0  ;;  %v3675_v63 = vld [vmem:[%s4941_s3 + $0x780] ss:$16 sps:$4 sm:$0xff]   ;;  %v3678_v0 = vld [vmem:[%s4941_s3 + $0x788] ss:$16 sps:$4 sm:$0xff]  }
 0x152   :  { %2284 = vmatpush1.bf16.msra.mxu0 %v3531_v15  ;;  %2448 = vmatpush1.bf16.msra.mxu1 %v3534_v16  ;;  %v3603_v15 = vld [vmem:[%s4941_s3 + $0x600] ss:$16 sps:$4 sm:$0xff]   ;;  %v3606_v16 = vld [vmem:[%s4941_s3 + $0x608] ss:$16 sps:$4 sm:$0xff]  }
 0x153   :  { %2285 = vmatprep.subr.bf16.mxu0 %v3539_v17  ;;  %2449 = vmatprep.subr.bf16.mxu1 %v3542_v18  ;;  %v3611_v17 = vld [vmem:[%s4941_s3 + $0x624] ss:$16 sps:$4 sm:$0xff]   ;;  %v3614_v18 = vld [vmem:[%s4941_s3 + $0x62c] ss:$16 sps:$4 sm:$0xff]  }
 0x156   :  { %2286 = vmatpush1.bf16.msra.mxu0 %v3537_v1  ;;  %2450 = vmatpush1.bf16.msra.mxu1 %v3540_v19  ;;  %v634_v1 = vpack.c.bf16 %v626_v11, %v626_v11  ;;  %v3609_v19 = vld [vmem:[%s4941_s3 + $0x620] ss:$16 sps:$4 sm:$0xff]   ;;  %v3684_v11 = vld [vmem:[%s4941_s3 + $0x7a8] ss:$16 sps:$4 sm:$0xff]  }
 0x157   :  { %2287 = vmatprep.subr.bf16.mxu0 %v3545_v20  ;;  %2451 = vmatprep.subr.bf16.mxu1 %v3548_v21  ;;  %v3612_v20 = vld [vmem:[%s4941_s3 + $0x628] ss:$16 sps:$4 sm:$0xff]   ;;  %v3617_v21 = vld [vmem:[%s4941_s3 + $0x644] ss:$16 sps:$4 sm:$0xff]  }
 0x15a   :  { %2288 = vmatpush1.bf16.msra.mxu0 %v3543_v22  ;;  %2452 = vmatpush1.bf16.msra.mxu1 %v3546_v23  ;;  %v3620_v22 = vld [vmem:[%s4941_s3 + $0x64c] ss:$16 sps:$4 sm:$0xff]   ;;  %v3615_v23 = vld [vmem:[%s4941_s3 + $0x640] ss:$16 sps:$4 sm:$0xff]  }
 0x15b   :  { %2289 = vmatprep.subr.bf16.mxu0 %v3551_v24  ;;  %2453 = vmatprep.subr.bf16.mxu1 %v3554_v26  ;;  %v3618_v24 = vld [vmem:[%s4941_s3 + $0x648] ss:$16 sps:$4 sm:$0xff]   ;;  %v3623_v26 = vld [vmem:[%s4941_s3 + $0x664] ss:$16 sps:$4 sm:$0xff]  }
 0x15e   :  { %2290 = vmatpush1.bf16.msra.mxu0 %v3549_v27  ;;  %2454 = vmatpush1.bf16.msra.mxu1 %v3552_v28  ;;  %v3626_v27 = vld [vmem:[%s4941_s3 + $0x66c] ss:$16 sps:$4 sm:$0xff]   ;;  %v3621_v28 = vld [vmem:[%s4941_s3 + $0x660] ss:$16 sps:$4 sm:$0xff]  }
 0x15f   :  { %2291 = vmatprep.subr.bf16.mxu0 %v3557_v30  ;;  %2455 = vmatprep.subr.bf16.mxu1 %v3560_v31  ;;  %v3624_v30 = vld [vmem:[%s4941_s3 + $0x668] ss:$16 sps:$4 sm:$0xff]   ;;  %v3629_v31 = vld [vmem:[%s4941_s3 + $0x684] ss:$16 sps:$4 sm:$0xff]  }
 0x162   :  { %2292 = vmatpush1.bf16.msra.mxu0 %v3555_v32  ;;  %2456 = vmatpush1.bf16.msra.mxu1 %v3558_v33  ;;  %v3632_v32 = vld [vmem:[%s4941_s3 + $0x68c] ss:$16 sps:$4 sm:$0xff]   ;;  %v3627_v33 = vld [vmem:[%s4941_s3 + $0x680] ss:$16 sps:$4 sm:$0xff]  }
 0x163   :  { %2293 = vmatprep.subr.bf16.mxu0 %v3563_v34  ;;  %2457 = vmatprep.subr.bf16.mxu1 %v3566_v35  ;;  %v3630_v34 = vld [vmem:[%s4941_s3 + $0x688] ss:$16 sps:$4 sm:$0xff]   ;;  %v3635_v35 = vld [vmem:[%s4941_s3 + $0x6a4] ss:$16 sps:$4 sm:$0xff]  }
 0x166   :  { %2294 = vmatpush1.bf16.msra.mxu0 %v3561_v6  ;;  %2458 = vmatpush1.bf16.msra.mxu1 %v3564_v36  ;;  %v3638_v6 = vld [vmem:[%s4941_s3 + $0x6ac] ss:$16 sps:$4 sm:$0xff]   ;;  %v3633_v36 = vld [vmem:[%s4941_s3 + $0x6a0] ss:$16 sps:$4 sm:$0xff]  }
 0x167   :  { %2295 = vmatprep.subr.bf16.mxu0 %v3569_v37  ;;  %2459 = vmatprep.subr.bf16.mxu1 %v3572_v38  ;;  %v3636_v37 = vld [vmem:[%s4941_s3 + $0x6a8] ss:$16 sps:$4 sm:$0xff]   ;;  %v3641_v38 = vld [vmem:[%s4941_s3 + $0x6c4] ss:$16 sps:$4 sm:$0xff]  }
 0x16a   :  { %2296 = vmatpush1.bf16.msra.mxu0 %v3567_v39  ;;  %2460 = vmatpush1.bf16.msra.mxu1 %v3570_v40  ;;  %v3644_v39 = vld [vmem:[%s4941_s3 + $0x6cc] ss:$16 sps:$4 sm:$0xff]   ;;  %v3639_v40 = vld [vmem:[%s4941_s3 + $0x6c0] ss:$16 sps:$4 sm:$0xff]  }
 0x16b   :  { %2297 = vmatprep.subr.bf16.mxu0 %v3575_v41  ;;  %2461 = vmatprep.subr.bf16.mxu1 %v3578_v42  ;;  %v3642_v41 = vld [vmem:[%s4941_s3 + $0x6c8] ss:$16 sps:$4 sm:$0xff]   ;;  %v3647_v42 = vld [vmem:[%s4941_s3 + $0x6e4] ss:$16 sps:$4 sm:$0xff]  }
 0x16e   :  { %2298 = vmatpush1.bf16.msra.mxu0 %v3573_v43  ;;  %2462 = vmatpush1.bf16.msra.mxu1 %v3576_v25  ;;  %v3650_v43 = vld [vmem:[%s4941_s3 + $0x6ec] ss:$16 sps:$4 sm:$0xff]   ;;  %v3645_v25 = vld [vmem:[%s4941_s3 + $0x6e0] ss:$16 sps:$4 sm:$0xff]  }
 0x16f   :  { %2299 = vmatprep.subr.bf16.mxu0 %v3581_v44  ;;  %2463 = vmatprep.subr.bf16.mxu1 %v3584_v45  ;;  %v3648_v44 = vld [vmem:[%s4941_s3 + $0x6e8] ss:$16 sps:$4 sm:$0xff]   ;;  %v3653_v45 = vld [vmem:[%s4941_s3 + $0x704] ss:$16 sps:$4 sm:$0xff]  }
 0x172   :  { %2300 = vmatpush1.bf16.msra.mxu0 %v3579_v47  ;;  %2464 = vmatpush1.bf16.msra.mxu1 %v3582_v48  ;;  %v3651_v47 = vld [vmem:[%s4941_s3 + $0x700] ss:$16 sps:$4 sm:$0xff]   ;;  %v3654_v48 = vld [vmem:[%s4941_s3 + $0x708] ss:$16 sps:$4 sm:$0xff]  }
 0x173   :  { %2301 = vmatprep.subr.bf16.mxu0 %v3587_v49  ;;  %2465 = vmatprep.subr.bf16.mxu1 %v3590_v50  ;;  %v3659_v49 = vld [vmem:[%s4941_s3 + $0x724] ss:$16 sps:$4 sm:$0xff]   ;;  %v3662_v50 = vld [vmem:[%s4941_s3 + $0x72c] ss:$16 sps:$4 sm:$0xff]  }
 0x176   :  { %2302 = vmatpush1.bf16.msra.mxu0 %v3585_v53  ;;  %2466 = vmatpush1.bf16.msra.mxu1 %v3588_v54  ;;  %v3665_v53 = vld [vmem:[%s4941_s3 + $0x744] ss:$16 sps:$4 sm:$0xff]   ;;  %v3668_v54 = vld [vmem:[%s4941_s3 + $0x74c] ss:$16 sps:$4 sm:$0xff]  }
 0x177   :  { %2303 = vmatprep.subr.bf16.mxu0 %v3593_v55  ;;  %2467 = vmatprep.subr.bf16.mxu1 %v3596_v56  ;;  %v3663_v55 = vld [vmem:[%s4941_s3 + $0x740] ss:$16 sps:$4 sm:$0xff]   ;;  %v3666_v56 = vld [vmem:[%s4941_s3 + $0x748] ss:$16 sps:$4 sm:$0xff]  }
 0x17a   :  { %2304 = vmatpush1.bf16.msra.mxu0 %v3591_v60  ;;  %2468 = vmatpush1.bf16.msra.mxu1 %v3594_v61  ;;  %v3669_v60 = vld [vmem:[%s4941_s3 + $0x760] ss:$16 sps:$4 sm:$0xff]   ;;  %v3672_v61 = vld [vmem:[%s4941_s3 + $0x768] ss:$16 sps:$4 sm:$0xff]  }
 0x17b   :  { %2305 = vmatprep.subr.bf16.mxu0 %v3599_v62  ;;  %2469 = vmatprep.subr.bf16.mxu1 %v3602_v58  ;;  %v3677_v62 = vld [vmem:[%s4941_s3 + $0x784] ss:$16 sps:$4 sm:$0xff]   ;;  %v3680_v58 = vld [vmem:[%s4941_s3 + $0x78c] ss:$16 sps:$4 sm:$0xff]  }
 0x17e   :  { %2306 = vmatpush1.bf16.msra.mxu0 %v3597_v2  ;;  %2470 = vmatpush1.bf16.msra.mxu1 %v3600_v3  ;;  %v121_v2 = vsub.s32 6, %v4200_v7  ;;  %v3683_v3 = vld [vmem:[%s4941_s3 + $0x7a4] ss:$16 sps:$4 sm:$0xff]  }
 0x17f   :  { %2316 = vmatprep.subr.bf16.mxu0 %v3605_v4  ;;  %2480 = vmatprep.subr.bf16.mxu1 %v3608_v13  ;;  %v3686_v4 = vld [vmem:[%s4941_s3 + $0x7ac] ss:$16 sps:$4 sm:$0xff]   ;;  %v3681_v13 = vld [vmem:[%s4941_s3 + $0x7a0] ss:$16 sps:$4 sm:$0xff]  }
 0x181   :  { %2308 = vmatmul.mubr.bf16.vlgmr.msra.gmra.mrb[8].mxu0 %v631_v12  ;;  %2472 = vmatmul.mubr.bf16.vlgmr.msra.gmra.mrb[8].mxu1 %v631_v12  ;;  %v122_v12 = vrot.slane %v4206_v9, %v121_v2  ;;  %v3690_v9 = vld [vmem:[%s4941_s3 + $0x7c8] ss:$16 sps:$4 sm:$0xff]  }
 0x182   :  { %2317 = vmatpush1.bf16.msra.mxu0 %v3603_v15  ;;  %2481 = vmatpush1.bf16.msra.mxu1 %v3606_v16  ;;  %v3689_v15 = vld [vmem:[%s4941_s3 + $0x7c4] ss:$16 sps:$4 sm:$0xff]   ;;  %v3692_v16 = vld [vmem:[%s4941_s3 + $0x7cc] ss:$16 sps:$4 sm:$0xff]  }
 0x183   :  { %2318 = vmatprep.subr.bf16.mxu0 %v3611_v17  ;;  %2482 = vmatprep.subr.bf16.mxu1 %v3614_v18  ;;  %v3687_v17 = vld [vmem:[%s4941_s3 + $0x7c0] ss:$16 sps:$4 sm:$0xff]   ;;  %v613_v18 = vadd.f32 %v4327_v5, %v122_v12  ;;  %v3696_v5 = vld [vmem:[%s4941_s3 + $0x7e8] ss:$16 sps:$4 sm:$0xff]  }
 0x184   :  { %2348 = vmatprep.mubr.bf16.mxu0 %v634_v1  ;;  %2512 = vmatprep.mubr.bf16.mxu1 %v634_v1  ;;  %v3695_v1 = vld [vmem:[%s4941_s3 + $0x7e4] ss:$16 sps:$4 sm:$0xff]  }
 0x186   :  { %2319 = vmatpush1.bf16.msra.mxu0 %v3609_v19  ;;  %2483 = vmatpush1.bf16.msra.mxu1 %v3612_v20  ;;  %v3698_v19 = vld [vmem:[%s4941_s3 + $0x7ec] ss:$16 sps:$4 sm:$0xff]   ;;  %v3693_v20 = vld [vmem:[%s4941_s3 + $0x7e0] ss:$16 sps:$4 sm:$0xff]  }
 0x187   :  { %2320 = vmatprep.subr.bf16.mxu0 %v3617_v21  ;;  %2484 = vmatprep.subr.bf16.mxu1 %v3620_v22  ;;  %v625_v21 = vmax.f32 %v613_v18, 0.0  ;;  %v3699_v22 = vld [vmem:[%s4943_s5 + $0x40] sm:$0xff]  }
 0x18a   :  { %2321 = vmatpush1.bf16.msra.mxu0 %v3615_v23  ;;  %2485 = vmatpush1.bf16.msra.mxu1 %v3618_v24  ;;  %v3700_v23 = vld [vmem:[%s4943_s5 + $0xc0] sm:$0xff]  }
 0x18b   :  { %2322 = vmatprep.subr.bf16.mxu0 %v3623_v26  ;;  %2486 = vmatprep.subr.bf16.mxu1 %v3626_v27  ;;  %v3701_v24 = vld [vmem:[%s4943_s5] sm:$0xff]   ;;  %v633_v27 = vpack.c.bf16 %v625_v21, %v625_v21 }
 0x18c   :  { %v3702_v26 = vld [vmem:[%s4943_s5 + $0x80] sm:$0xff]  }
 0x18e   :  { %2323 = vmatpush1.bf16.msra.mxu0 %v3621_v28  ;;  %2487 = vmatpush1.bf16.msra.mxu1 %v3624_v30  ;;  %v3703_v28 = vld [vmem:[%s4943_s5 + $0x48] sm:$0xff]  }
 0x18f   :  { %2324 = vmatprep.subr.bf16.mxu0 %v3629_v31  ;;  %2488 = vmatprep.subr.bf16.mxu1 %v3632_v32  ;;  %v3704_v30 = vld [vmem:[%s4943_s5 + $0xc8] sm:$0xff]  }
 0x190   :  { %v3705_v31 = vld [vmem:[%s4943_s5 + $0x8] sm:$0xff]  }
 0x191   :  { %v3706_v32 = vld [vmem:[%s4943_s5 + $0x88] sm:$0xff]  }
 0x192   :  { %2325 = vmatpush1.bf16.msra.mxu0 %v3627_v33  ;;  %2489 = vmatpush1.bf16.msra.mxu1 %v3630_v34  ;;  %v3707_v33 = vld [vmem:[%s4943_s5 + $0x50] sm:$0xff]  }
 0x193   :  { %2326 = vmatprep.subr.bf16.mxu0 %v3635_v35  ;;  %2490 = vmatprep.subr.bf16.mxu1 %v3638_v6  ;;  %v3708_v34 = vld [vmem:[%s4943_s5 + $0xd0] sm:$0xff]  }
 0x194   :  { %v3709_v35 = vld [vmem:[%s4943_s5 + $0x10] sm:$0xff]  }
 0x195   :  { %v3710_v6 = vld [vmem:[%s4943_s5 + $0x90] sm:$0xff]  }
 0x196   :  { %2327 = vmatpush1.bf16.msra.mxu0 %v3633_v36  ;;  %2491 = vmatpush1.bf16.msra.mxu1 %v3636_v37  ;;  %v3711_v36 = vld [vmem:[%s4943_s5 + $0x58] sm:$0xff]  }
 0x197   :  { %2328 = vmatprep.subr.bf16.mxu0 %v3641_v38  ;;  %2492 = vmatprep.subr.bf16.mxu1 %v3644_v39  ;;  %v3712_v37 = vld [vmem:[%s4943_s5 + $0xd8] sm:$0xff]  }
 0x198   :  { %v3713_v38 = vld [vmem:[%s4943_s5 + $0x18] sm:$0xff]  }
 0x199   :  { %v3714_v39 = vld [vmem:[%s4943_s5 + $0x98] sm:$0xff]  }
 0x19a   :  { %2329 = vmatpush1.bf16.msra.mxu0 %v3639_v40  ;;  %2493 = vmatpush1.bf16.msra.mxu1 %v3642_v41  ;;  %v3715_v40 = vld [vmem:[%s4943_s5 + $0x60] sm:$0xff]  }
 0x19b   :  { %2330 = vmatprep.subr.bf16.mxu0 %v3647_v42  ;;  %2494 = vmatprep.subr.bf16.mxu1 %v3650_v43  ;;  %v3716_v41 = vld [vmem:[%s4943_s5 + $0xe0] sm:$0xff]  }
 0x19c   :  { %v3717_v42 = vld [vmem:[%s4943_s5 + $0x20] sm:$0xff]  }
 0x19d   :  { %v3718_v43 = vld [vmem:[%s4943_s5 + $0xa0] sm:$0xff]  }
 0x19e   :  { %2331 = vmatpush1.bf16.msra.mxu0 %v3645_v25  ;;  %2495 = vmatpush1.bf16.msra.mxu1 %v3648_v44  ;;  %v3719_v25 = vld [vmem:[%s4943_s5 + $0x68] sm:$0xff]  }
 0x19f   :  { %2332 = vmatprep.subr.bf16.mxu0 %v3653_v45  ;;  %2496 = vmatprep.subr.bf16.mxu1 %v3656_v46  ;;  %v3720_v44 = vld [vmem:[%s4943_s5 + $0xe8] sm:$0xff]  }
 0x1a0   :  { %v3721_v45 = vld [vmem:[%s4943_s5 + $0x28] sm:$0xff]  }
 0x1a1   :  { %v3722_v46 = vld [vmem:[%s4943_s5 + $0xa8] sm:$0xff]  }
 0x1a2   :  { %2333 = vmatpush1.bf16.msra.mxu0 %v3651_v47  ;;  %2497 = vmatpush1.bf16.msra.mxu1 %v3654_v48  ;;  %v3723_v47 = vld [vmem:[%s4943_s5 + $0x70] sm:$0xff]  }
 0x1a3   :  { %2334 = vmatprep.subr.bf16.mxu0 %v3659_v49  ;;  %2498 = vmatprep.subr.bf16.mxu1 %v3662_v50  ;;  %v3724_v48 = vld [vmem:[%s4943_s5 + $0xf0] sm:$0xff]  }
 0x1a4   :  { %v3725_v49 = vld [vmem:[%s4943_s5 + $0x30] sm:$0xff]  }
 0x1a5   :  { %v3726_v50 = vld [vmem:[%s4943_s5 + $0xb0] sm:$0xff]  }
 0x1a6   :  { %2335 = vmatpush1.bf16.msra.mxu0 %v3657_v51  ;;  %2499 = vmatpush1.bf16.msra.mxu1 %v3660_v52  ;;  %v3727_v51 = vld [vmem:[%s4943_s5 + $0x78] sm:$0xff]  }
 0x1a7   :  { %2336 = vmatprep.subr.bf16.mxu0 %v3665_v53  ;;  %2500 = vmatprep.subr.bf16.mxu1 %v3668_v54  ;;  %v3728_v52 = vld [vmem:[%s4943_s5 + $0xf8] sm:$0xff]  }
 0x1a8   :  { %v3729_v53 = vld [vmem:[%s4943_s5 + $0x38] sm:$0xff]  }
 0x1a9   :  { %v3730_v54 = vld [vmem:[%s4943_s5 + $0xb8] sm:$0xff]  }
 0x1aa   :  { %2337 = vmatpush1.bf16.msra.mxu0 %v3663_v55  ;;  %2501 = vmatpush1.bf16.msra.mxu1 %v3666_v56  ;;  %v891_v55 = vld [vmem:[%s4942_s4] sm:$0xf] }
 0x1ab   :  { %2338 = vmatprep.subr.bf16.mxu0 %v3671_v57  ;;  %2502 = vmatprep.subr.bf16.mxu1 %v3674_v59  ;;  %v896_v56 = vrot.slane %v891_v55, %v97_v8  ;;  %v904_v57 = vrot.slane %v891_v55, %v105_v29  ;;  %v900_v59 = vrot.slane %v891_v55, %v101_v10 }
 0x1ae   :  { %2339 = vmatpush1.bf16.msra.mxu0 %v3669_v60  ;;  %2503 = vmatpush1.bf16.msra.mxu1 %v3672_v61  ;;  %v908_v60 = vrot.slane %v891_v55, %v109_v14 }
 0x1af   :  { %2340 = vmatprep.subr.bf16.mxu0 %v3677_v62  ;;  %2504 = vmatprep.subr.bf16.mxu1 %v3680_v58 }
 0x1b2   :  { %2341 = vmatpush1.bf16.msra.mxu0 %v3675_v63  ;;  %2505 = vmatpush1.bf16.msra.mxu1 %v3678_v0 }
 0x1b3   :  { %2342 = vmatprep.subr.bf16.mxu0 %v3683_v3  ;;  %2506 = vmatprep.subr.bf16.mxu1 %v3686_v4 }
 0x1b6   :  { %2343 = vmatpush1.bf16.msra.mxu0 %v3681_v13  ;;  %2507 = vmatpush1.bf16.msra.mxu1 %v3684_v11 }
 0x1b7   :  { %2344 = vmatprep.subr.bf16.mxu0 %v3689_v15  ;;  %2508 = vmatprep.subr.bf16.mxu1 %v3692_v16 }
 0x1ba   :  { %2345 = vmatpush1.bf16.msra.mxu0 %v3687_v17  ;;  %2509 = vmatpush1.bf16.msra.mxu1 %v3690_v9 }
 0x1bb   :  { %2346 = vmatprep.subr.bf16.mxu0 %v3695_v1  ;;  %2510 = vmatprep.subr.bf16.mxu1 %v3698_v19  ;;  %v3208_v19 = vld [vmem:[%s4944_s6] ss:$0 sm:$0xff] }
 0x1be   :  { %2347 = vmatpush1.bf16.msra.mxu0 %v3693_v20  ;;  %2511 = vmatpush1.bf16.msra.mxu1 %v3696_v5 }
 0x1bf   :  { %3241 = vmatprep.subr.bf16.mxu0 %v3699_v22  ;;  %3263 = vmatprep.subr.bf16.mxu1 %v3700_v23 }
 0x1c1   :  { %2349 = vmatmul.mubr.bf16.vlgmr.msra.gmra.mrb[8].mxu0 %v633_v27  ;;  %2513 = vmatmul.mubr.bf16.vlgmr.msra.gmra.mrb[8].mxu1 %v633_v27 }
 0x1c2   :  { %3242 = vmatpush3.bf16.msra.mxu0 %v3701_v24  ;;  %3264 = vmatpush3.bf16.msra.mxu1 %v3702_v26 }
 0x1c3   :  { %3243 = vmatprep.subr.bf16.mxu0 %v3703_v28  ;;  %3265 = vmatprep.subr.bf16.mxu1 %v3704_v30 }
 0x1c6   :  { %3244 = vmatpush3.bf16.msra.mxu0 %v3705_v31  ;;  %3266 = vmatpush3.bf16.msra.mxu1 %v3706_v32 }
 0x1c7   :  { %3245 = vmatprep.subr.bf16.mxu0 %v3707_v33  ;;  %3267 = vmatprep.subr.bf16.mxu1 %v3708_v34 }
 0x1ca   :  { %3246 = vmatpush3.bf16.msra.mxu0 %v3709_v35  ;;  %3268 = vmatpush3.bf16.msra.mxu1 %v3710_v6 }
 0x1cb   :  { %3247 = vmatprep.subr.bf16.mxu0 %v3711_v36  ;;  %3269 = vmatprep.subr.bf16.mxu1 %v3712_v37 }
 0x1ce   :  { %3248 = vmatpush3.bf16.msra.mxu0 %v3713_v38  ;;  %3270 = vmatpush3.bf16.msra.mxu1 %v3714_v39 }
 0x1cf   :  { %3249 = vmatprep.subr.bf16.mxu0 %v3715_v40  ;;  %3271 = vmatprep.subr.bf16.mxu1 %v3716_v41 }
 0x1d2   :  { %3250 = vmatpush3.bf16.msra.mxu0 %v3717_v42  ;;  %3272 = vmatpush3.bf16.msra.mxu1 %v3718_v43 }
 0x1d3   :  { %3251 = vmatprep.subr.bf16.mxu0 %v3719_v25  ;;  %3273 = vmatprep.subr.bf16.mxu1 %v3720_v44 }
 0x1d6   :  { %3252 = vmatpush3.bf16.msra.mxu0 %v3721_v45  ;;  %3274 = vmatpush3.bf16.msra.mxu1 %v3722_v46 }
 0x1d7   :  { %3253 = vmatprep.subr.bf16.mxu0 %v3723_v47  ;;  %3275 = vmatprep.subr.bf16.mxu1 %v3724_v48 }
 0x1da   :  { %3254 = vmatpush3.bf16.msra.mxu0 %v3725_v49  ;;  %3276 = vmatpush3.bf16.msra.mxu1 %v3726_v50 }
 0x1db   :  { %3255 = vmatprep.subr.bf16.mxu0 %v3727_v51  ;;  %3277 = vmatprep.subr.bf16.mxu1 %v3728_v52 }
 0x1de   :  { %3256 = vmatpush3.bf16.msra.mxu0 %v3729_v53  ;;  %3278 = vmatpush3.bf16.msra.mxu1 %v3730_v54 }
 0x294   :  { %v2350_v61 = vpop.f32.mrb[8].mxu0  ;;  %v2514_v62 = vpop.f32.mrb[8].mxu1 }
 0x295   :  { %v3285_v58 = vadd.f32 %v2350_v61, %v896_v56  ;;  %v3287_v63 = vadd.f32 %v2514_v62, %v904_v57  ;;  %v2352_v0 = vpop.f32.mrb[9].mxu0  ;;  %v2516_v2 = vpop.f32.mrb[9].mxu1 }
 0x296   :  { %v3286_v3 = vadd.f32 %v2352_v0, %v900_v59  ;;  %v3288_v4 = vadd.f32 %v2516_v2, %v908_v60  ;;  %v2354_v13 = vpop.f32.mrb[10].mxu0  ;;  %v2518_v11 = vpop.f32.mrb[10].mxu1 }
 0x297   :  { %v2521_v8 = vmax.f32 %v3285_v58, 0.0  ;;  %v2523_v12 = vmax.f32 %v3287_v63, 0.0  ;;  %v2355_v15 = vpop.f32.mrb[11].mxu0  ;;  %v2519_v29 = vpop.f32.mrb[11].mxu1 }
 0x298   :  { %v2522_v16 = vmax.f32 %v3286_v3, 0.0  ;;  %v2524_v17 = vmax.f32 %v3288_v4, 0.0 }
 0x299   :  { %v2525_v7 = vpack.c.bf16 %v2521_v8, %v2521_v8  ;;  %v2527_v14 = vpack.c.bf16 %v2523_v12, %v2523_v12 }
 0x29a   :  { %v2526_v10 = vpack.c.bf16 %v2522_v16, %v2522_v16  ;;  %v2528_v9 = vpack.c.bf16 %v2524_v17, %v2524_v17 }
 0x29c   :  { %2824 = vmatprep.mubr.bf16.mxu0 %v2526_v10  ;;  %2864 = vmatprep.mubr.bf16.mxu1 %v2528_v9 }
 0x29d   :  { %2825 = vmatmul.mubr.bf16.vlgmr.msra.gmra.mrb[12].mxu0 %v2525_v7  ;;  %2865 = vmatmul.mubr.bf16.vlgmr.msra.gmra.mrb[12].mxu1 %v2527_v14 }
 0x370   :  { %v3257_v18 = vpop.f32.mrb[12].mxu0  ;;  %v3279_v1 = vpop.f32.mrb[12].mxu1 }
 0x371   :  { %v3258_v20 = vpop.f32.mrb[13].mxu0  ;;  %v3280_v5 = vpop.f32.mrb[13].mxu1 }
 0x372   :  { %v3259_v21 = vadd.f32 %v3258_v20, %v3257_v18  ;;  %v3281_v22 = vadd.f32 %v3280_v5, %v3279_v1  ;;  %v3260_v23 = vpop.f32.mrb[14].mxu0  ;;  %v3282_v24 = vpop.f32.mrb[14].mxu1 }
 0x373   :  { %v3261_v26 = vpop.f32.mrb[15].mxu0  ;;  %v3283_v27 = vpop.f32.mrb[15].mxu1 }
 0x374   :  { %v2827_v28 = vadd.f32 %v3259_v21, %v3208_v19 }
 0x376   :  { %v2867_v30 = vadd.f32 %v3281_v22, %v2827_v28 }
 0x378   :  { %v2872_v31 = vmax.f32 %v2867_v30, 0.0 }
 0x37a   :  { %2873 = vst [vmem:[#allocation2] sm:$0xff] %v2872_v31 }
 0x37b   :  { %3742 = shalt.err (!%p3739_p4)
}
 0x37c   :  { %s3743_s25 = scalar_lea.hbm %s4945_s7, 128 }
 0x37d   :  { %p3744_p5 = scmp.ne.s32.totalorder %s4945_s7, %s3743_s25  ;;  %p3747_p6 = scmp.lt.u32.totalorder %s3743_s25, %s4945_s7 }
 0x37f   :  { %p3749_p7 = pnand %p3747_p6, %p3744_p5 }
 0x381   :  { %3752 = shalt.err (!%p3749_p7)
}
 0x382   :  { %2883 = dma.vmem_to_hbm [thread:$0]  %s2881_s22, 128, %s4945_s7, [#allocation3]  }
 0x383   :  { %3753 = dma.done.wait [#allocation3], 128  }
 0x384   :  { %3754 = vsyncadd [#allocation3], 4294967168 }
 0x385   :  { %2887 = vsyncpa [#allocation3], 1 }

</bundles_post_ra>
